<compile_context>
chip_gen: v7x
topology: tpu7x:2x2x1
jax: 0.10.0
libtpu: 0.0.40
codegen_flags: <defaults>
</compile_context>

<pallas_src>
import functools

import jax
import jax.numpy as jnp
from jax import lax
from jax.experimental import pallas as pl
from jax.experimental.pallas import tpu as pltpu


def _mc_kernel(iso_ref, lane_ref, level_ref, halo_ref, deform_ref,
               cube_ref, mask_ref, verts_ref,
               *, resolution, tile_i, lo, hi):
    R = resolution
    T = tile_i
    L2 = R * R
    iso = iso_ref[0]
    inv = 1.0 / float(R - 1)
    scale = float(hi) - float(lo)

    lev = level_ref[...]              # (T, L2)  f32
    halo = halo_ref[0]                # (4, L2)  f32: [level, dx, dy, dz] @ next plane
    D = deform_ref[...]               # (3, T, L2) f32

    # lane-constant normalized j/k coordinates + interior-validity (host-precomputed,
    # avoids in-kernel integer div/mod and full-tile iota temporaries).
    gj = lane_ref[0:1, :]             # (1, L2)
    gk = lane_ref[1:2, :]
    vjb = lane_ref[2:3, :] > 0.5      # j < R-1
    vkb = lane_ref[3:4, :] > 0.5      # k < R-1

    # i-axis (tile-major) coordinate + validity
    row = lax.broadcasted_iota(jnp.int32, (T, L2), 0)
    gidx = row + pl.program_id(0) * T
    gi = gidx.astype(jnp.float32) * inv
    vib = gidx < (R - 1)

    last_row = row == (T - 1)

    def shift_i(a, next_plane):
        # a[r] <- a[r+1]; last local row <- first plane of the next tile (halo)
        return jnp.where(last_row, next_plane, jnp.roll(a, -1, axis=0))

    def shift_j(a):
        return jnp.roll(a, -R, axis=-1)

    def shift_k(a):
        return jnp.roll(a, -1, axis=-1)

    # ---- single-axis shifted level values (shared by cube bits and edges) ----
    Lx = shift_i(lev, halo[0:1, :])
    Ly = shift_j(lev)
    Lz = shift_k(lev)

    occ0 = lev < iso
    occx = Lx < iso
    occy = Ly < iso
    occz = Lz < iso

    # ---- marching-cubes configuration index: 8 corner bits, incremental shifts ----
    occx_i = occx.astype(jnp.int32)
    occy_i = occy.astype(jnp.int32)
    occ_xy = shift_j(occx_i)
    occ_xz = shift_k(occx_i)
    occ_xyz = shift_k(occ_xy)
    occ_yz = shift_k(occy_i)
    # corner order: (0,0,0),(1,0,0),(1,1,0),(0,1,0),(0,0,1),(1,0,1),(1,1,1),(0,1,1)
    bits = (occ0.astype(jnp.int32), occx_i, occ_xy, occy_i,
            occz.astype(jnp.int32), occ_xz, occ_xyz, occ_yz)
    cube = bits[0]
    for c in range(1, 8):
        cube = cube | (bits[c] << c)
    valid_cell = vib & vjb & vkb
    cube_ref[0] = jnp.where(valid_cell, cube, 0).astype(jnp.uint8)

    # ---- per-edge crossings + differentiable vertex interpolation ----
    D0 = [D[c] for c in range(3)]
    base = (gi, gj, gk)
    p0 = [base[c] + D0[c] for c in range(3)]          # hoisted: e-independent
    L1s = (Lx, Ly, Lz)
    occ1s = (occx, occy, occz)
    valids = (vib, vjb, vkb)

    for e in range(3):
        L1 = L1s[e]
        crossing = (occ0 != occ1s[e]) & valids[e]
        denom = L1 - lev
        nonzero = jnp.abs(denom) > 1e-12
        safe = jnp.where(nonzero, denom, 1.0)
        t = jnp.clip((iso - lev) * pl.reciprocal(safe, approx=True), 0.0, 1.0)
        t = jnp.where(nonzero, t, 0.5)
        mask_ref[e, 0] = crossing.astype(jnp.int8)
        for c in range(3):
            if e == 0:
                D1 = shift_i(D0[c], halo[1 + c:2 + c, :])
            elif e == 1:
                D1 = shift_j(D0[c])
            else:
                D1 = shift_k(D0[c])
            d = D1 - D0[c]
            if c == e:
                d = d + inv
            v = p0[c] + t * d                          # lerp: p0 + t*(p1-p0)
            if scale != 1.0 or float(lo) != 0.0:       # compile-time skip for (0,1)
                v = v * scale + lo
            verts_ref[e, c] = jnp.where(crossing, v, 0.0)


class DiffMarchingCubeHelperPallas:
    """JAX/Pallas port of DiffMarchingCubeHelper (forward hot path in-kernel)."""

    def __init__(self, resolution: int, point_range=(0.0, 1.0)):
        self.resolution = int(resolution)
        self.points_range = (float(point_range[0]), float(point_range[1]))
        R = self.resolution
        self.tile_i = 8 if R % 8 == 0 else R
        self.n_tiles = R // self.tile_i

        # lane-constant table: normalized j/k coordinates and interior flags
        lane = jnp.arange(R * R, dtype=jnp.int32)
        j = lane // R
        k = lane - j * R
        inv = 1.0 / float(R - 1)
        self._lane_info = jnp.stack([
            j.astype(jnp.float32) * inv,
            k.astype(jnp.float32) * inv,
            (j < R - 1).astype(jnp.float32),
            (k < R - 1).astype(jnp.float32),
        ], axis=0)                                    # (4, R*R) f32
        self._grid_vertices_cache = None

    @property
    def grid_vertices(self):
        if self._grid_vertices_cache is None:
            lo, hi = self.points_range
            r = jnp.linspace(lo, hi, self.resolution)
            x, y, z = jnp.meshgrid(r, r, r, indexing="ij")
            verts = jnp.stack([x, y, z], axis=-1).reshape(-1, 3)
            # mirrors the reference implementation (including its re-scaling)
            verts = verts * (hi - lo) + lo
            self._grid_vertices_cache = verts
        return self._grid_vertices_cache

    def __call__(self, level, deformation=None, isovalue=0.0):
        R = self.resolution
        T = self.tile_i
        n_tiles = self.n_tiles
        L2 = R * R
        lo, hi = self.points_range

        level = jnp.asarray(level, jnp.float32).reshape(R, L2)
        if deformation is None:
            deform = jnp.zeros((3, R, L2), jnp.float32)
        else:
            # NOTE: this channel-first transpose is one extra 12*R^3-byte XLA pass;
            # feed the deformation channel-first upstream to avoid it.
            deform = (jnp.asarray(deformation, jnp.float32)
                      .reshape(R, L2, 3).transpose(2, 0, 1))

        # per-tile one-plane halo: [level, deform_x, deform_y, deform_z] at plane (i+1)*T
        halo_rows = jnp.minimum((jnp.arange(n_tiles) + 1) * T, R - 1)
        halo = jnp.concatenate(
            [level[halo_rows][:, None, :],                     # (n_tiles, 1, L2)
             deform[:, halo_rows, :].transpose(1, 0, 2)],      # (n_tiles, 3, L2)
            axis=1)                                            # (n_tiles, 4, L2)

        iso = jnp.asarray([isovalue], jnp.float32)
        kernel = functools.partial(_mc_kernel, resolution=R, tile_i=T,
                                   lo=lo, hi=hi)

        cube, mask, verts = pl.pallas_call(
            kernel,
            grid=(n_tiles,),
            in_specs=[
                pl.BlockSpec(memory_space=pltpu.SMEM),              # isovalue
                pl.BlockSpec((4, L2), lambda i: (0, 0)),            # lane_info
                pl.BlockSpec((T, L2), lambda i: (i, 0)),            # level tile
                pl.BlockSpec((1, 4, L2), lambda i: (i, 0, 0)),      # halo plane
                pl.BlockSpec((3, T, L2), lambda i: (0, i, 0)),      # deform tile
            ],
            out_specs=[
                pl.BlockSpec((1, T, L2), lambda i: (i, 0, 0)),      # cube index (u8)
                pl.BlockSpec((3, 1, T, L2), lambda i: (0, i, 0, 0)),  # edge mask (i8)
                pl.BlockSpec((3, 3, T, L2), lambda i: (0, 0, i, 0)),  # edge verts (f32)
            ],
            out_shape=(
                jax.ShapeDtypeStruct((n_tiles, T, L2), jnp.uint8),
                jax.ShapeDtypeStruct((3, n_tiles, T, L2), jnp.int8),
                jax.ShapeDtypeStruct((3, 3, R, L2), jnp.float32),
            ),
            compiler_params=pltpu.CompilerParams(
                dimension_semantics=("parallel",)),
        )(iso, self._lane_info, level, halo, deform)

        # Only trivial (contiguous) reshapes below -- no extra HBM transpose pass.
        # TODO(synk): diso.DiffMC's triangle-table lookup and compaction to
        # variable-length (v_pos, t_pos_idx) has data-dependent output shapes and
        # no clean Pallas/TPU equivalent; we return the dense per-edge crossing
        # vertices, their validity mask, and the per-cell cube index instead.
        return {
            "v_pos_candidates": verts.reshape(3, 3, R * R * R),   # (edge_axis, xyz, voxel)
            "v_mask": mask.reshape(3, R * R * R),                 # int8 0/1
            "cube_index": cube.reshape(R, R, R),                  # uint8 0..255
        }


def _reference_forward(level3, deform4, isovalue, lo, hi):
    """Pure-jnp dense reference with the same masking conventions (for checking)."""
    R = level3.shape[0]
    inv = 1.0 / (R - 1)
    iso = jnp.float32(isovalue)

    def shift(a, ax):
        return jnp.roll(a, -1, axis=ax)

    ar = jnp.arange(R)
    gi, gj, gk = jnp.meshgrid(ar, ar, ar, indexing="ij")
    base = [gi * inv, gj * inv, gk * inv]
    vi, vj, vk = gi < R - 1, gj < R - 1, gk < R - 1
    valid_axis = [vi, vj, vk]
    valid_cell = vi & vj & vk

    corners = [(0, 0, 0), (1, 0, 0), (1, 1, 0), (0, 1, 0),
               (0, 0, 1), (1, 0, 1), (1, 1, 1), (0, 1, 1)]
    cube = jnp.zeros((R, R, R), jnp.int32)
    for c, (dx, dy, dz) in enumerate(corners):
        Ls = level3
        if dx:
            Ls = shift(Ls, 0)
        if dy:
            Ls = shift(Ls, 1)
        if dz:
            Ls = shift(Ls, 2)
        cube = cube | ((Ls < iso).astype(jnp.int32) << c)
    cube = jnp.where(valid_cell, cube, 0)

    occ0 = level3 < iso
    D = [deform4[..., c] for c in range(3)]
    masks, verts = [], []
    for e in range(3):
        L1 = shift(level3, e)
        crossing = (occ0 != (L1 < iso)) & valid_axis[e]
        denom = L1 - level3
        nz = jnp.abs(denom) > 1e-12
        t = jnp.clip((iso - level3) / jnp.where(nz, denom, 1.0), 0.0, 1.0)
        t = jnp.where(nz, t, 0.5)
        masks.append(crossing)
        vs = []
        for c in range(3):
            p0 = base[c] + D[c]
            d = shift(D[c], e) - D[c] + (inv if c == e else 0.0)
            v = p0 + t * d
            if (hi - lo) != 1.0 or lo != 0.0:
                v = v * (hi - lo) + lo
            vs.append(jnp.where(crossing, v, 0.0))
        verts.append(jnp.stack(vs))
    return cube, jnp.stack(masks), jnp.stack(verts)


if __name__ == "__main__":
    R = 16
    helper = DiffMarchingCubeHelperPallas(resolution=R, point_range=(0.0, 1.0))

    key = jax.random.PRNGKey(0)
    k1, k2 = jax.random.split(key)

    # deterministic synthetic level set: noisy sphere SDF sampled on the grid
    gv = helper.grid_vertices                                   # (R^3, 3)
    noise = 0.05 * jax.random.normal(k1, (R * R * R, 1), jnp.float32)
    level = (jnp.linalg.norm(gv - 0.5, axis=-1, keepdims=True) - 0.35) + noise
    deformation = 0.01 * jax.random.normal(k2, (R * R * R, 3), jnp.float32)

    out = helper(level, deformation, isovalue=0.0)
    jax.block_until_ready(out)

    assert out["v_pos_candidates"].shape == (3, 3, R * R * R)
    assert out["v_mask"].shape == (3, R * R * R)
    assert out["cube_index"].shape == (R, R, R)

    # correctness check against a pure-jnp dense reference
    ref_cube, ref_mask, ref_verts = _reference_forward(
        level.reshape(R, R, R), deformation.reshape(R, R, R, 3), 0.0, 0.0, 1.0)
    assert jnp.array_equal(out["cube_index"].astype(jnp.int32), ref_cube)
    assert jnp.array_equal(out["v_mask"].astype(jnp.int32),
                           ref_mask.reshape(3, -1).astype(jnp.int32))
    assert jnp.allclose(out["v_pos_candidates"],
                        ref_verts.reshape(3, 3, -1), atol=5e-3, rtol=0.0)
    assert int(out["v_mask"].astype(jnp.int32).sum()) > 0   # the sphere does cross the grid

    print("KERNEL_OK")
</pallas_src>

<mosaic_0001>
module attributes {stable_mosaic.version = 11 : i64} {
  func.func @_mc_kernel(%arg0: i32, %arg1: memref<1xf32, #tpu.memory_space<smem>>, %arg2: memref<4x256xf32, #tpu.memory_space<vmem>>, %arg3: memref<8x256xf32, #tpu.memory_space<vmem>>, %arg4: memref<1x4x256xf32, #tpu.memory_space<vmem>>, %arg5: memref<3x8x256xf32, #tpu.memory_space<vmem>>, %arg6: memref<1x8x256xi8, #tpu.memory_space<vmem>>, %arg7: memref<3x1x8x256xi8, #tpu.memory_space<vmem>>, %arg8: memref<3x3x8x256xf32, #tpu.memory_space<vmem>>) attributes {dimension_semantics = [#tpu.dimension_semantics<parallel>], iteration_bounds = array<i64: 2>, scalar_prefetch = 0 : i64, scratch_operands = 0 : i64, tpu.core_type = #tpu.core_type<tc>, window_params = [{transform_indices = @transform_0, window_bounds = array<i64: 1>}, {pipeline_mode = #tpu.pipeline_mode<synchronous>, transform_indices = @transform_1, window_bounds = array<i64: 4, 256>}, {transform_indices = @transform_2, window_bounds = array<i64: 8, 256>}, {transform_indices = @transform_3, window_bounds = array<i64: 1, 4, 256>}, {transform_indices = @transform_4, window_bounds = array<i64: 3, 8, 256>}, {transform_indices = @transform_5, window_bounds = array<i64: 1, 8, 256>}, {transform_indices = @transform_6, window_bounds = array<i64: 3, 1, 8, 256>}, {transform_indices = @transform_7, window_bounds = array<i64: 3, 3, 8, 256>}]} {
    %c0 = arith.constant 0 : index
    %0 = memref.load %arg1[%c0] : memref<1xf32, #tpu.memory_space<smem>>
    %c0_0 = arith.constant 0 : index
    %c0_1 = arith.constant 0 : index
    %1 = vector.load %arg3[%c0_0, %c0_1] : memref<8x256xf32, #tpu.memory_space<vmem>>, vector<8x256xf32>
    %c0_2 = arith.constant 0 : index
    %c0_3 = arith.constant 0 : index
    %c0_4 = arith.constant 0 : index
    %2 = vector.load %arg4[%c0_2, %c0_3, %c0_4] : memref<1x4x256xf32, #tpu.memory_space<vmem>>, vector<1x4x256xf32>
    %3 = vector.shape_cast %2 : vector<1x4x256xf32> to vector<4x256xf32>
    %c0_5 = arith.constant 0 : index
    %c0_6 = arith.constant 0 : index
    %c0_7 = arith.constant 0 : index
    %4 = vector.load %arg5[%c0_5, %c0_6, %c0_7] : memref<3x8x256xf32, #tpu.memory_space<vmem>>, vector<3x8x256xf32>
    %c0_8 = arith.constant 0 : index
    %c0_9 = arith.constant 0 : index
    %5 = vector.load %arg2[%c0_8, %c0_9] : memref<4x256xf32, #tpu.memory_space<vmem>>, vector<1x256xf32>
    %c1 = arith.constant 1 : index
    %c0_10 = arith.constant 0 : index
    %6 = vector.load %arg2[%c1, %c0_10] : memref<4x256xf32, #tpu.memory_space<vmem>>, vector<1x256xf32>
    %c2 = arith.constant 2 : index
    %c0_11 = arith.constant 0 : index
    %7 = vector.load %arg2[%c2, %c0_11] : memref<4x256xf32, #tpu.memory_space<vmem>>, vector<1x256xf32>
    %cst = arith.constant 5.000000e-01 : f32
    %8 = vector.broadcast %cst : f32 to vector<1x256xf32>
    %9 = arith.cmpf ogt, %7, %8 : vector<1x256xf32>
    %c3 = arith.constant 3 : index
    %c0_12 = arith.constant 0 : index
    %10 = vector.load %arg2[%c3, %c0_12] : memref<4x256xf32, #tpu.memory_space<vmem>>, vector<1x256xf32>
    %cst_13 = arith.constant 5.000000e-01 : f32
    %11 = vector.broadcast %cst_13 : f32 to vector<1x256xf32>
    %12 = arith.cmpf ogt, %10, %11 : vector<1x256xf32>
    %13 = tpu.iota {dimensions = array<i32: 0>} : vector<8x256xi32>
    %c8_i32 = arith.constant 8 : i32
    %14 = arith.muli %arg0, %c8_i32 : i32
    %15 = vector.broadcast %14 : i32 to vector<8x256xi32>
    %16 = arith.addi %13, %15 : vector<8x256xi32>
    %17 = arith.sitofp %16 : vector<8x256xi32> to vector<8x256xf32>
    %cst_14 = arith.constant 0.0666666701 : f32
    %18 = vector.broadcast %cst_14 : f32 to vector<8x256xf32>
    %19 = arith.mulf %17, %18 : vector<8x256xf32>
    %c15_i32 = arith.constant 15 : i32
    %20 = vector.broadcast %c15_i32 : i32 to vector<8x256xi32>
    %21 = arith.cmpi slt, %16, %20 : vector<8x256xi32>
    %c7_i32 = arith.constant 7 : i32
    %22 = vector.broadcast %c7_i32 : i32 to vector<8x256xi32>
    %23 = arith.cmpi eq, %13, %22 : vector<8x256xi32>
    %24 = vector.extract_strided_slice %3 {offsets = [0, 0], sizes = [1, 256], strides = [1, 1]} : vector<4x256xf32> to vector<1x256xf32>
    %25 = vector.extract_strided_slice %1 {offsets = [1, 0], sizes = [7, 256], strides = [1, 1]} : vector<8x256xf32> to vector<7x256xf32>
    %26 = vector.extract_strided_slice %1 {offsets = [0, 0], sizes = [1, 256], strides = [1, 1]} : vector<8x256xf32> to vector<1x256xf32>
    %27 = tpu.concatenate %25, %26 in 0 : vector<7x256xf32>, vector<1x256xf32> -> vector<8x256xf32>
    %28 = vector.shape_cast %24 : vector<1x256xf32> to vector<1x256xf32>
    %29 = vector.broadcast %28 : vector<1x256xf32> to vector<8x256xf32>
    %30 = arith.select %23, %29, %27 : vector<8x256xi1>, vector<8x256xf32>
    %31 = vector.extract_strided_slice %1 {offsets = [0, 16], sizes = [8, 240], strides = [1, 1]} : vector<8x256xf32> to vector<8x240xf32>
    %32 = vector.extract_strided_slice %1 {offsets = [0, 0], sizes = [8, 16], strides = [1, 1]} : vector<8x256xf32> to vector<8x16xf32>
    %33 = tpu.concatenate %31, %32 in 1 : vector<8x240xf32>, vector<8x16xf32> -> vector<8x256xf32>
    %34 = vector.extract_strided_slice %1 {offsets = [0, 1], sizes = [8, 255], strides = [1, 1]} : vector<8x256xf32> to vector<8x255xf32>
    %35 = vector.extract_strided_slice %1 {offsets = [0, 0], sizes = [8, 1], strides = [1, 1]} : vector<8x256xf32> to vector<8x1xf32>
    %36 = tpu.concatenate %34, %35 in 1 : vector<8x255xf32>, vector<8x1xf32> -> vector<8x256xf32>
    %37 = vector.broadcast %0 : f32 to vector<8x256xf32>
    %38 = arith.cmpf olt, %1, %37 : vector<8x256xf32>
    %39 = vector.broadcast %0 : f32 to vector<8x256xf32>
    %40 = arith.cmpf olt, %30, %39 : vector<8x256xf32>
    %41 = vector.broadcast %0 : f32 to vector<8x256xf32>
    %42 = arith.cmpf olt, %33, %41 : vector<8x256xf32>
    %43 = vector.broadcast %0 : f32 to vector<8x256xf32>
    %44 = arith.cmpf olt, %36, %43 : vector<8x256xf32>
    %45 = arith.extui %40 : vector<8x256xi1> to vector<8x256xi32>
    %46 = arith.extui %42 : vector<8x256xi1> to vector<8x256xi32>
    %47 = vector.extract_strided_slice %45 {offsets = [0, 16], sizes = [8, 240], strides = [1, 1]} : vector<8x256xi32> to vector<8x240xi32>
    %48 = vector.extract_strided_slice %45 {offsets = [0, 0], sizes = [8, 16], strides = [1, 1]} : vector<8x256xi32> to vector<8x16xi32>
    %49 = tpu.concatenate %47, %48 in 1 : vector<8x240xi32>, vector<8x16xi32> -> vector<8x256xi32>
    %50 = vector.extract_strided_slice %45 {offsets = [0, 1], sizes = [8, 255], strides = [1, 1]} : vector<8x256xi32> to vector<8x255xi32>
    %51 = vector.extract_strided_slice %45 {offsets = [0, 0], sizes = [8, 1], strides = [1, 1]} : vector<8x256xi32> to vector<8x1xi32>
    %52 = tpu.concatenate %50, %51 in 1 : vector<8x255xi32>, vector<8x1xi32> -> vector<8x256xi32>
    %53 = vector.extract_strided_slice %49 {offsets = [0, 1], sizes = [8, 255], strides = [1, 1]} : vector<8x256xi32> to vector<8x255xi32>
    %54 = vector.extract_strided_slice %49 {offsets = [0, 0], sizes = [8, 1], strides = [1, 1]} : vector<8x256xi32> to vector<8x1xi32>
    %55 = tpu.concatenate %53, %54 in 1 : vector<8x255xi32>, vector<8x1xi32> -> vector<8x256xi32>
    %56 = vector.extract_strided_slice %46 {offsets = [0, 1], sizes = [8, 255], strides = [1, 1]} : vector<8x256xi32> to vector<8x255xi32>
    %57 = vector.extract_strided_slice %46 {offsets = [0, 0], sizes = [8, 1], strides = [1, 1]} : vector<8x256xi32> to vector<8x1xi32>
    %58 = tpu.concatenate %56, %57 in 1 : vector<8x255xi32>, vector<8x1xi32> -> vector<8x256xi32>
    %59 = arith.extui %38 : vector<8x256xi1> to vector<8x256xi32>
    %60 = arith.extui %44 : vector<8x256xi1> to vector<8x256xi32>
    %c1_i32 = arith.constant 1 : i32
    %61 = vector.broadcast %c1_i32 : i32 to vector<8x256xi32>
    %62 = arith.shli %45, %61 : vector<8x256xi32>
    %63 = arith.ori %59, %62 : vector<8x256xi32>
    %c2_i32 = arith.constant 2 : i32
    %64 = vector.broadcast %c2_i32 : i32 to vector<8x256xi32>
    %65 = arith.shli %49, %64 : vector<8x256xi32>
    %66 = arith.ori %63, %65 : vector<8x256xi32>
    %c3_i32 = arith.constant 3 : i32
    %67 = vector.broadcast %c3_i32 : i32 to vector<8x256xi32>
    %68 = arith.shli %46, %67 : vector<8x256xi32>
    %69 = arith.ori %66, %68 : vector<8x256xi32>
    %c4_i32 = arith.constant 4 : i32
    %70 = vector.broadcast %c4_i32 : i32 to vector<8x256xi32>
    %71 = arith.shli %60, %70 : vector<8x256xi32>
    %72 = arith.ori %69, %71 : vector<8x256xi32>
    %c5_i32 = arith.constant 5 : i32
    %73 = vector.broadcast %c5_i32 : i32 to vector<8x256xi32>
    %74 = arith.shli %52, %73 : vector<8x256xi32>
    %75 = arith.ori %72, %74 : vector<8x256xi32>
    %c6_i32 = arith.constant 6 : i32
    %76 = vector.broadcast %c6_i32 : i32 to vector<8x256xi32>
    %77 = arith.shli %55, %76 : vector<8x256xi32>
    %78 = arith.ori %75, %77 : vector<8x256xi32>
    %c7_i32_15 = arith.constant 7 : i32
    %79 = vector.broadcast %c7_i32_15 : i32 to vector<8x256xi32>
    %80 = arith.shli %58, %79 : vector<8x256xi32>
    %81 = arith.ori %78, %80 : vector<8x256xi32>
    %82 = vector.broadcast %9 : vector<1x256xi1> to vector<8x256xi1>
    %83 = arith.andi %21, %82 : vector<8x256xi1>
    %84 = vector.broadcast %12 : vector<1x256xi1> to vector<8x256xi1>
    %85 = arith.andi %83, %84 : vector<8x256xi1>
    %c0_i32 = arith.constant 0 : i32
    %86 = vector.broadcast %c0_i32 : i32 to vector<8x256xi32>
    %87 = arith.select %85, %81, %86 : vector<8x256xi1>, vector<8x256xi32>
    %88 = arith.trunci %87 : vector<8x256xi32> to vector<8x256xi8>
    %c0_16 = arith.constant 0 : index
    %c0_17 = arith.constant 0 : index
    %c0_18 = arith.constant 0 : index
    %89 = vector.load %arg6[%c0_16, %c0_17, %c0_18] : memref<1x8x256xi8, #tpu.memory_space<vmem>>, vector<1x8x256xi8>
    %90 = vector.shape_cast %89 : vector<1x8x256xi8> to vector<8x256xi8>
    %91 = vector.shape_cast %88 : vector<8x256xi8> to vector<1x8x256xi8>
    tpu.vector_store %arg6[%c0_16, %c0_17, %c0_18], %91 {strides = array<i32>} : memref<1x8x256xi8, #tpu.memory_space<vmem>>, vector<1x8x256xi8>,
    %92 = vector.extract_strided_slice %4 {offsets = [0, 0, 0], sizes = [1, 8, 256], strides = [1, 1, 1]} : vector<3x8x256xf32> to vector<1x8x256xf32>
    %93 = vector.shape_cast %92 : vector<1x8x256xf32> to vector<8x256xf32>
    %94 = vector.extract_strided_slice %4 {offsets = [1, 0, 0], sizes = [1, 8, 256], strides = [1, 1, 1]} : vector<3x8x256xf32> to vector<1x8x256xf32>
    %95 = vector.shape_cast %94 : vector<1x8x256xf32> to vector<8x256xf32>
    %96 = vector.extract_strided_slice %4 {offsets = [2, 0, 0], sizes = [1, 8, 256], strides = [1, 1, 1]} : vector<3x8x256xf32> to vector<1x8x256xf32>
    %97 = vector.shape_cast %96 : vector<1x8x256xf32> to vector<8x256xf32>
    %98 = arith.addf %19, %93 : vector<8x256xf32>
    %99 = vector.broadcast %5 : vector<1x256xf32> to vector<8x256xf32>
    %100 = arith.addf %99, %95 : vector<8x256xf32>
    %101 = vector.broadcast %6 : vector<1x256xf32> to vector<8x256xf32>
    %102 = arith.addf %101, %97 : vector<8x256xf32>
    %103 = arith.xori %38, %40 : vector<8x256xi1>
    %104 = arith.andi %103, %21 : vector<8x256xi1>
    %105 = arith.subf %30, %1 : vector<8x256xf32>
    %106 = math.absf %105 : vector<8x256xf32>
    %cst_19 = arith.constant 9.99999996E-13 : f32
    %107 = vector.broadcast %cst_19 : f32 to vector<8x256xf32>
    %108 = arith.cmpf ogt, %106, %107 : vector<8x256xf32>
    %cst_20 = arith.constant 1.000000e+00 : f32
    %109 = vector.broadcast %cst_20 : f32 to vector<8x256xf32>
    %110 = arith.select %108, %105, %109 : vector<8x256xi1>, vector<8x256xf32>
    %111 = vector.broadcast %0 : f32 to vector<8x256xf32>
    %112 = arith.subf %111, %1 : vector<8x256xf32>
    %113 = tpu.reciprocal %110 {approx = true} : vector<8x256xf32> -> vector<8x256xf32>
    %114 = arith.mulf %112, %113 : vector<8x256xf32>
    %cst_21 = arith.constant 0.000000e+00 : f32
    %cst_22 = arith.constant 1.000000e+00 : f32
    %115 = vector.broadcast %cst_21 : f32 to vector<8x256xf32>
    %116 = arith.maximumf %115, %114 : vector<8x256xf32>
    %117 = vector.broadcast %cst_22 : f32 to vector<8x256xf32>
    %118 = arith.minimumf %117, %116 : vector<8x256xf32>
    %cst_23 = arith.constant 5.000000e-01 : f32
    %119 = vector.broadcast %cst_23 : f32 to vector<8x256xf32>
    %120 = arith.select %108, %118, %119 : vector<8x256xi1>, vector<8x256xf32>
    %121 = arith.extui %104 : vector<8x256xi1> to vector<8x256xi8>
    %c0_24 = arith.constant 0 : index
    %c0_25 = arith.constant 0 : index
    %c0_26 = arith.constant 0 : index
    %c0_27 = arith.constant 0 : index
    %122 = vector.load %arg7[%c0_24, %c0_25, %c0_26, %c0_27] : memref<3x1x8x256xi8, #tpu.memory_space<vmem>>, vector<1x1x8x256xi8>
    %123 = vector.shape_cast %122 : vector<1x1x8x256xi8> to vector<8x256xi8>
    %124 = vector.shape_cast %121 : vector<8x256xi8> to vector<1x1x8x256xi8>
    tpu.vector_store %arg7[%c0_24, %c0_25, %c0_26, %c0_27], %124 {strides = array<i32>} : memref<3x1x8x256xi8, #tpu.memory_space<vmem>>, vector<1x1x8x256xi8>,
    %125 = vector.extract_strided_slice %3 {offsets = [1, 0], sizes = [1, 256], strides = [1, 1]} : vector<4x256xf32> to vector<1x256xf32>
    %126 = vector.extract_strided_slice %93 {offsets = [1, 0], sizes = [7, 256], strides = [1, 1]} : vector<8x256xf32> to vector<7x256xf32>
    %127 = vector.extract_strided_slice %93 {offsets = [0, 0], sizes = [1, 256], strides = [1, 1]} : vector<8x256xf32> to vector<1x256xf32>
    %128 = tpu.concatenate %126, %127 in 0 : vector<7x256xf32>, vector<1x256xf32> -> vector<8x256xf32>
    %129 = vector.shape_cast %125 : vector<1x256xf32> to vector<1x256xf32>
    %130 = vector.broadcast %129 : vector<1x256xf32> to vector<8x256xf32>
    %131 = arith.select %23, %130, %128 : vector<8x256xi1>, vector<8x256xf32>
    %132 = arith.subf %131, %93 : vector<8x256xf32>
    %cst_28 = arith.constant 0.0666666701 : f32
    %133 = vector.broadcast %cst_28 : f32 to vector<8x256xf32>
    %134 = arith.addf %132, %133 : vector<8x256xf32>
    %135 = arith.mulf %120, %134 : vector<8x256xf32>
    %136 = arith.addf %98, %135 : vector<8x256xf32>
    %cst_29 = arith.constant 0.000000e+00 : f32
    %137 = vector.broadcast %cst_29 : f32 to vector<8x256xf32>
    %138 = arith.select %104, %136, %137 : vector<8x256xi1>, vector<8x256xf32>
    %c0_30 = arith.constant 0 : index
    %c0_31 = arith.constant 0 : index
    %c0_32 = arith.constant 0 : index
    %c0_33 = arith.constant 0 : index
    %139 = vector.load %arg8[%c0_30, %c0_31, %c0_32, %c0_33] : memref<3x3x8x256xf32, #tpu.memory_space<vmem>>, vector<1x1x8x256xf32>
    %140 = vector.shape_cast %139 : vector<1x1x8x256xf32> to vector<8x256xf32>
    %141 = vector.shape_cast %138 : vector<8x256xf32> to vector<1x1x8x256xf32>
    tpu.vector_store %arg8[%c0_30, %c0_31, %c0_32, %c0_33], %141 {strides = array<i32>} : memref<3x3x8x256xf32, #tpu.memory_space<vmem>>, vector<1x1x8x256xf32>,
    %142 = vector.extract_strided_slice %3 {offsets = [2, 0], sizes = [1, 256], strides = [1, 1]} : vector<4x256xf32> to vector<1x256xf32>
    %143 = vector.extract_strided_slice %95 {offsets = [1, 0], sizes = [7, 256], strides = [1, 1]} : vector<8x256xf32> to vector<7x256xf32>
    %144 = vector.extract_strided_slice %95 {offsets = [0, 0], sizes = [1, 256], strides = [1, 1]} : vector<8x256xf32> to vector<1x256xf32>
    %145 = tpu.concatenate %143, %144 in 0 : vector<7x256xf32>, vector<1x256xf32> -> vector<8x256xf32>
    %146 = vector.shape_cast %142 : vector<1x256xf32> to vector<1x256xf32>
    %147 = vector.broadcast %146 : vector<1x256xf32> to vector<8x256xf32>
    %148 = arith.select %23, %147, %145 : vector<8x256xi1>, vector<8x256xf32>
    %149 = arith.subf %148, %95 : vector<8x256xf32>
    %150 = arith.mulf %120, %149 : vector<8x256xf32>
    %151 = arith.addf %100, %150 : vector<8x256xf32>
    %cst_34 = arith.constant 0.000000e+00 : f32
    %152 = vector.broadcast %cst_34 : f32 to vector<8x256xf32>
    %153 = arith.select %104, %151, %152 : vector<8x256xi1>, vector<8x256xf32>
    %c0_35 = arith.constant 0 : index
    %c1_36 = arith.constant 1 : index
    %c0_37 = arith.constant 0 : index
    %c0_38 = arith.constant 0 : index
    %154 = vector.load %arg8[%c0_35, %c1_36, %c0_37, %c0_38] : memref<3x3x8x256xf32, #tpu.memory_space<vmem>>, vector<1x1x8x256xf32>
    %155 = vector.shape_cast %154 : vector<1x1x8x256xf32> to vector<8x256xf32>
    %156 = vector.shape_cast %153 : vector<8x256xf32> to vector<1x1x8x256xf32>
    tpu.vector_store %arg8[%c0_35, %c1_36, %c0_37, %c0_38], %156 {strides = array<i32>} : memref<3x3x8x256xf32, #tpu.memory_space<vmem>>, vector<1x1x8x256xf32>,
    %157 = vector.extract_strided_slice %3 {offsets = [3, 0], sizes = [1, 256], strides = [1, 1]} : vector<4x256xf32> to vector<1x256xf32>
    %158 = vector.extract_strided_slice %97 {offsets = [1, 0], sizes = [7, 256], strides = [1, 1]} : vector<8x256xf32> to vector<7x256xf32>
    %159 = vector.extract_strided_slice %97 {offsets = [0, 0], sizes = [1, 256], strides = [1, 1]} : vector<8x256xf32> to vector<1x256xf32>
    %160 = tpu.concatenate %158, %159 in 0 : vector<7x256xf32>, vector<1x256xf32> -> vector<8x256xf32>
    %161 = vector.shape_cast %157 : vector<1x256xf32> to vector<1x256xf32>
    %162 = vector.broadcast %161 : vector<1x256xf32> to vector<8x256xf32>
    %163 = arith.select %23, %162, %160 : vector<8x256xi1>, vector<8x256xf32>
    %164 = arith.subf %163, %97 : vector<8x256xf32>
    %165 = arith.mulf %120, %164 : vector<8x256xf32>
    %166 = arith.addf %102, %165 : vector<8x256xf32>
    %cst_39 = arith.constant 0.000000e+00 : f32
    %167 = vector.broadcast %cst_39 : f32 to vector<8x256xf32>
    %168 = arith.select %104, %166, %167 : vector<8x256xi1>, vector<8x256xf32>
    %c0_40 = arith.constant 0 : index
    %c2_41 = arith.constant 2 : index
    %c0_42 = arith.constant 0 : index
    %c0_43 = arith.constant 0 : index
    %169 = vector.load %arg8[%c0_40, %c2_41, %c0_42, %c0_43] : memref<3x3x8x256xf32, #tpu.memory_space<vmem>>, vector<1x1x8x256xf32>
    %170 = vector.shape_cast %169 : vector<1x1x8x256xf32> to vector<8x256xf32>
    %171 = vector.shape_cast %168 : vector<8x256xf32> to vector<1x1x8x256xf32>
    tpu.vector_store %arg8[%c0_40, %c2_41, %c0_42, %c0_43], %171 {strides = array<i32>} : memref<3x3x8x256xf32, #tpu.memory_space<vmem>>, vector<1x1x8x256xf32>,
    %172 = arith.xori %38, %42 : vector<8x256xi1>
    %173 = vector.broadcast %9 : vector<1x256xi1> to vector<8x256xi1>
    %174 = arith.andi %172, %173 : vector<8x256xi1>
    %175 = arith.subf %33, %1 : vector<8x256xf32>
    %176 = math.absf %175 : vector<8x256xf32>
    %cst_44 = arith.constant 9.99999996E-13 : f32
    %177 = vector.broadcast %cst_44 : f32 to vector<8x256xf32>
    %178 = arith.cmpf ogt, %176, %177 : vector<8x256xf32>
    %cst_45 = arith.constant 1.000000e+00 : f32
    %179 = vector.broadcast %cst_45 : f32 to vector<8x256xf32>
    %180 = arith.select %178, %175, %179 : vector<8x256xi1>, vector<8x256xf32>
    %181 = vector.broadcast %0 : f32 to vector<8x256xf32>
    %182 = arith.subf %181, %1 : vector<8x256xf32>
    %183 = tpu.reciprocal %180 {approx = true} : vector<8x256xf32> -> vector<8x256xf32>
    %184 = arith.mulf %182, %183 : vector<8x256xf32>
    %cst_46 = arith.constant 0.000000e+00 : f32
    %cst_47 = arith.constant 1.000000e+00 : f32
    %185 = vector.broadcast %cst_46 : f32 to vector<8x256xf32>
    %186 = arith.maximumf %185, %184 : vector<8x256xf32>
    %187 = vector.broadcast %cst_47 : f32 to vector<8x256xf32>
    %188 = arith.minimumf %187, %186 : vector<8x256xf32>
    %cst_48 = arith.constant 5.000000e-01 : f32
    %189 = vector.broadcast %cst_48 : f32 to vector<8x256xf32>
    %190 = arith.select %178, %188, %189 : vector<8x256xi1>, vector<8x256xf32>
    %191 = arith.extui %174 : vector<8x256xi1> to vector<8x256xi8>
    %c1_49 = arith.constant 1 : index
    %c0_50 = arith.constant 0 : index
    %c0_51 = arith.constant 0 : index
    %c0_52 = arith.constant 0 : index
    %192 = vector.load %arg7[%c1_49, %c0_50, %c0_51, %c0_52] : memref<3x1x8x256xi8, #tpu.memory_space<vmem>>, vector<1x1x8x256xi8>
    %193 = vector.shape_cast %192 : vector<1x1x8x256xi8> to vector<8x256xi8>
    %194 = vector.shape_cast %191 : vector<8x256xi8> to vector<1x1x8x256xi8>
    tpu.vector_store %arg7[%c1_49, %c0_50, %c0_51, %c0_52], %194 {strides = array<i32>} : memref<3x1x8x256xi8, #tpu.memory_space<vmem>>, vector<1x1x8x256xi8>,
    %195 = vector.extract_strided_slice %93 {offsets = [0, 16], sizes = [8, 240], strides = [1, 1]} : vector<8x256xf32> to vector<8x240xf32>
    %196 = vector.extract_strided_slice %93 {offsets = [0, 0], sizes = [8, 16], strides = [1, 1]} : vector<8x256xf32> to vector<8x16xf32>
    %197 = tpu.concatenate %195, %196 in 1 : vector<8x240xf32>, vector<8x16xf32> -> vector<8x256xf32>
    %198 = arith.subf %197, %93 : vector<8x256xf32>
    %199 = arith.mulf %190, %198 : vector<8x256xf32>
    %200 = arith.addf %98, %199 : vector<8x256xf32>
    %cst_53 = arith.constant 0.000000e+00 : f32
    %201 = vector.broadcast %cst_53 : f32 to vector<8x256xf32>
    %202 = arith.select %174, %200, %201 : vector<8x256xi1>, vector<8x256xf32>
    %c1_54 = arith.constant 1 : index
    %c0_55 = arith.constant 0 : index
    %c0_56 = arith.constant 0 : index
    %c0_57 = arith.constant 0 : index
    %203 = vector.load %arg8[%c1_54, %c0_55, %c0_56, %c0_57] : memref<3x3x8x256xf32, #tpu.memory_space<vmem>>, vector<1x1x8x256xf32>
    %204 = vector.shape_cast %203 : vector<1x1x8x256xf32> to vector<8x256xf32>
    %205 = vector.shape_cast %202 : vector<8x256xf32> to vector<1x1x8x256xf32>
    tpu.vector_store %arg8[%c1_54, %c0_55, %c0_56, %c0_57], %205 {strides = array<i32>} : memref<3x3x8x256xf32, #tpu.memory_space<vmem>>, vector<1x1x8x256xf32>,
    %206 = vector.extract_strided_slice %95 {offsets = [0, 16], sizes = [8, 240], strides = [1, 1]} : vector<8x256xf32> to vector<8x240xf32>
    %207 = vector.extract_strided_slice %95 {offsets = [0, 0], sizes = [8, 16], strides = [1, 1]} : vector<8x256xf32> to vector<8x16xf32>
    %208 = tpu.concatenate %206, %207 in 1 : vector<8x240xf32>, vector<8x16xf32> -> vector<8x256xf32>
    %209 = arith.subf %208, %95 : vector<8x256xf32>
    %cst_58 = arith.constant 0.0666666701 : f32
    %210 = vector.broadcast %cst_58 : f32 to vector<8x256xf32>
    %211 = arith.addf %209, %210 : vector<8x256xf32>
    %212 = arith.mulf %190, %211 : vector<8x256xf32>
    %213 = arith.addf %100, %212 : vector<8x256xf32>
    %cst_59 = arith.constant 0.000000e+00 : f32
    %214 = vector.broadcast %cst_59 : f32 to vector<8x256xf32>
    %215 = arith.select %174, %213, %214 : vector<8x256xi1>, vector<8x256xf32>
    %c1_60 = arith.constant 1 : index
    %c1_61 = arith.constant 1 : index
    %c0_62 = arith.constant 0 : index
    %c0_63 = arith.constant 0 : index
    %216 = vector.load %arg8[%c1_60, %c1_61, %c0_62, %c0_63] : memref<3x3x8x256xf32, #tpu.memory_space<vmem>>, vector<1x1x8x256xf32>
    %217 = vector.shape_cast %216 : vector<1x1x8x256xf32> to vector<8x256xf32>
    %218 = vector.shape_cast %215 : vector<8x256xf32> to vector<1x1x8x256xf32>
    tpu.vector_store %arg8[%c1_60, %c1_61, %c0_62, %c0_63], %218 {strides = array<i32>} : memref<3x3x8x256xf32, #tpu.memory_space<vmem>>, vector<1x1x8x256xf32>,
    %219 = vector.extract_strided_slice %97 {offsets = [0, 16], sizes = [8, 240], strides = [1, 1]} : vector<8x256xf32> to vector<8x240xf32>
    %220 = vector.extract_strided_slice %97 {offsets = [0, 0], sizes = [8, 16], strides = [1, 1]} : vector<8x256xf32> to vector<8x16xf32>
    %221 = tpu.concatenate %219, %220 in 1 : vector<8x240xf32>, vector<8x16xf32> -> vector<8x256xf32>
    %222 = arith.subf %221, %97 : vector<8x256xf32>
    %223 = arith.mulf %190, %222 : vector<8x256xf32>
    %224 = arith.addf %102, %223 : vector<8x256xf32>
    %cst_64 = arith.constant 0.000000e+00 : f32
    %225 = vector.broadcast %cst_64 : f32 to vector<8x256xf32>
    %226 = arith.select %174, %224, %225 : vector<8x256xi1>, vector<8x256xf32>
    %c1_65 = arith.constant 1 : index
    %c2_66 = arith.constant 2 : index
    %c0_67 = arith.constant 0 : index
    %c0_68 = arith.constant 0 : index
    %227 = vector.load %arg8[%c1_65, %c2_66, %c0_67, %c0_68] : memref<3x3x8x256xf32, #tpu.memory_space<vmem>>, vector<1x1x8x256xf32>
    %228 = vector.shape_cast %227 : vector<1x1x8x256xf32> to vector<8x256xf32>
    %229 = vector.shape_cast %226 : vector<8x256xf32> to vector<1x1x8x256xf32>
    tpu.vector_store %arg8[%c1_65, %c2_66, %c0_67, %c0_68], %229 {strides = array<i32>} : memref<3x3x8x256xf32, #tpu.memory_space<vmem>>, vector<1x1x8x256xf32>,
    %230 = arith.xori %38, %44 : vector<8x256xi1>
    %231 = vector.broadcast %12 : vector<1x256xi1> to vector<8x256xi1>
    %232 = arith.andi %230, %231 : vector<8x256xi1>
    %233 = arith.subf %36, %1 : vector<8x256xf32>
    %234 = math.absf %233 : vector<8x256xf32>
    %cst_69 = arith.constant 9.99999996E-13 : f32
    %235 = vector.broadcast %cst_69 : f32 to vector<8x256xf32>
    %236 = arith.cmpf ogt, %234, %235 : vector<8x256xf32>
    %cst_70 = arith.constant 1.000000e+00 : f32
    %237 = vector.broadcast %cst_70 : f32 to vector<8x256xf32>
    %238 = arith.select %236, %233, %237 : vector<8x256xi1>, vector<8x256xf32>
    %239 = vector.broadcast %0 : f32 to vector<8x256xf32>
    %240 = arith.subf %239, %1 : vector<8x256xf32>
    %241 = tpu.reciprocal %238 {approx = true} : vector<8x256xf32> -> vector<8x256xf32>
    %242 = arith.mulf %240, %241 : vector<8x256xf32>
    %cst_71 = arith.constant 0.000000e+00 : f32
    %cst_72 = arith.constant 1.000000e+00 : f32
    %243 = vector.broadcast %cst_71 : f32 to vector<8x256xf32>
    %244 = arith.maximumf %243, %242 : vector<8x256xf32>
    %245 = vector.broadcast %cst_72 : f32 to vector<8x256xf32>
    %246 = arith.minimumf %245, %244 : vector<8x256xf32>
    %cst_73 = arith.constant 5.000000e-01 : f32
    %247 = vector.broadcast %cst_73 : f32 to vector<8x256xf32>
    %248 = arith.select %236, %246, %247 : vector<8x256xi1>, vector<8x256xf32>
    %249 = arith.extui %232 : vector<8x256xi1> to vector<8x256xi8>
    %c2_74 = arith.constant 2 : index
    %c0_75 = arith.constant 0 : index
    %c0_76 = arith.constant 0 : index
    %c0_77 = arith.constant 0 : index
    %250 = vector.load %arg7[%c2_74, %c0_75, %c0_76, %c0_77] : memref<3x1x8x256xi8, #tpu.memory_space<vmem>>, vector<1x1x8x256xi8>
    %251 = vector.shape_cast %250 : vector<1x1x8x256xi8> to vector<8x256xi8>
    %252 = vector.shape_cast %249 : vector<8x256xi8> to vector<1x1x8x256xi8>
    tpu.vector_store %arg7[%c2_74, %c0_75, %c0_76, %c0_77], %252 {strides = array<i32>} : memref<3x1x8x256xi8, #tpu.memory_space<vmem>>, vector<1x1x8x256xi8>,
    %253 = vector.extract_strided_slice %93 {offsets = [0, 1], sizes = [8, 255], strides = [1, 1]} : vector<8x256xf32> to vector<8x255xf32>
    %254 = vector.extract_strided_slice %93 {offsets = [0, 0], sizes = [8, 1], strides = [1, 1]} : vector<8x256xf32> to vector<8x1xf32>
    %255 = tpu.concatenate %253, %254 in 1 : vector<8x255xf32>, vector<8x1xf32> -> vector<8x256xf32>
    %256 = arith.subf %255, %93 : vector<8x256xf32>
    %257 = arith.mulf %248, %256 : vector<8x256xf32>
    %258 = arith.addf %98, %257 : vector<8x256xf32>
    %cst_78 = arith.constant 0.000000e+00 : f32
    %259 = vector.broadcast %cst_78 : f32 to vector<8x256xf32>
    %260 = arith.select %232, %258, %259 : vector<8x256xi1>, vector<8x256xf32>
    %c2_79 = arith.constant 2 : index
    %c0_80 = arith.constant 0 : index
    %c0_81 = arith.constant 0 : index
    %c0_82 = arith.constant 0 : index
    %261 = vector.load %arg8[%c2_79, %c0_80, %c0_81, %c0_82] : memref<3x3x8x256xf32, #tpu.memory_space<vmem>>, vector<1x1x8x256xf32>
    %262 = vector.shape_cast %261 : vector<1x1x8x256xf32> to vector<8x256xf32>
    %263 = vector.shape_cast %260 : vector<8x256xf32> to vector<1x1x8x256xf32>
    tpu.vector_store %arg8[%c2_79, %c0_80, %c0_81, %c0_82], %263 {strides = array<i32>} : memref<3x3x8x256xf32, #tpu.memory_space<vmem>>, vector<1x1x8x256xf32>,
    %264 = vector.extract_strided_slice %95 {offsets = [0, 1], sizes = [8, 255], strides = [1, 1]} : vector<8x256xf32> to vector<8x255xf32>
    %265 = vector.extract_strided_slice %95 {offsets = [0, 0], sizes = [8, 1], strides = [1, 1]} : vector<8x256xf32> to vector<8x1xf32>
    %266 = tpu.concatenate %264, %265 in 1 : vector<8x255xf32>, vector<8x1xf32> -> vector<8x256xf32>
    %267 = arith.subf %266, %95 : vector<8x256xf32>
    %268 = arith.mulf %248, %267 : vector<8x256xf32>
    %269 = arith.addf %100, %268 : vector<8x256xf32>
    %cst_83 = arith.constant 0.000000e+00 : f32
    %270 = vector.broadcast %cst_83 : f32 to vector<8x256xf32>
    %271 = arith.select %232, %269, %270 : vector<8x256xi1>, vector<8x256xf32>
    %c2_84 = arith.constant 2 : index
    %c1_85 = arith.constant 1 : index
    %c0_86 = arith.constant 0 : index
    %c0_87 = arith.constant 0 : index
    %272 = vector.load %arg8[%c2_84, %c1_85, %c0_86, %c0_87] : memref<3x3x8x256xf32, #tpu.memory_space<vmem>>, vector<1x1x8x256xf32>
    %273 = vector.shape_cast %272 : vector<1x1x8x256xf32> to vector<8x256xf32>
    %274 = vector.shape_cast %271 : vector<8x256xf32> to vector<1x1x8x256xf32>
    tpu.vector_store %arg8[%c2_84, %c1_85, %c0_86, %c0_87], %274 {strides = array<i32>} : memref<3x3x8x256xf32, #tpu.memory_space<vmem>>, vector<1x1x8x256xf32>,
    %275 = vector.extract_strided_slice %97 {offsets = [0, 1], sizes = [8, 255], strides = [1, 1]} : vector<8x256xf32> to vector<8x255xf32>
    %276 = vector.extract_strided_slice %97 {offsets = [0, 0], sizes = [8, 1], strides = [1, 1]} : vector<8x256xf32> to vector<8x1xf32>
    %277 = tpu.concatenate %275, %276 in 1 : vector<8x255xf32>, vector<8x1xf32> -> vector<8x256xf32>
    %278 = arith.subf %277, %97 : vector<8x256xf32>
    %cst_88 = arith.constant 0.0666666701 : f32
    %279 = vector.broadcast %cst_88 : f32 to vector<8x256xf32>
    %280 = arith.addf %278, %279 : vector<8x256xf32>
    %281 = arith.mulf %248, %280 : vector<8x256xf32>
    %282 = arith.addf %102, %281 : vector<8x256xf32>
    %cst_89 = arith.constant 0.000000e+00 : f32
    %283 = vector.broadcast %cst_89 : f32 to vector<8x256xf32>
    %284 = arith.select %232, %282, %283 : vector<8x256xi1>, vector<8x256xf32>
    %c2_90 = arith.constant 2 : index
    %c2_91 = arith.constant 2 : index
    %c0_92 = arith.constant 0 : index
    %c0_93 = arith.constant 0 : index
    %285 = vector.load %arg8[%c2_90, %c2_91, %c0_92, %c0_93] : memref<3x3x8x256xf32, #tpu.memory_space<vmem>>, vector<1x1x8x256xf32>
    %286 = vector.shape_cast %285 : vector<1x1x8x256xf32> to vector<8x256xf32>
    %287 = vector.shape_cast %284 : vector<8x256xf32> to vector<1x1x8x256xf32>
    tpu.vector_store %arg8[%c2_90, %c2_91, %c0_92, %c0_93], %287 {strides = array<i32>} : memref<3x3x8x256xf32, #tpu.memory_space<vmem>>, vector<1x1x8x256xf32>,
    return
  }
  func.func @transform_0(%arg0: i32) -> i32 {
    %c0_i32 = arith.constant 0 : i32
    %c0_i32_0 = arith.constant 0 : i32
    return %c0_i32 : i32
  }
  func.func @transform_1(%arg0: i32) -> (i32, i32) {
    %c0_i32 = arith.constant 0 : i32
    %c0_i32_0 = arith.constant 0 : i32
    %c0_i32_1 = arith.constant 0 : i32
    return %c0_i32, %c0_i32_0 : i32, i32
  }
  func.func @transform_2(%arg0: i32) -> (i32, i32) {
    %c0_i32 = arith.constant 0 : i32
    %c0_i32_0 = arith.constant 0 : i32
    return %arg0, %c0_i32 : i32, i32
  }
  func.func @transform_3(%arg0: i32) -> (i32, i32, i32) {
    %c0_i32 = arith.constant 0 : i32
    %c0_i32_0 = arith.constant 0 : i32
    %c0_i32_1 = arith.constant 0 : i32
    return %arg0, %c0_i32, %c0_i32_0 : i32, i32, i32
  }
  func.func @transform_4(%arg0: i32) -> (i32, i32, i32) {
    %c0_i32 = arith.constant 0 : i32
    %c0_i32_0 = arith.constant 0 : i32
    %c0_i32_1 = arith.constant 0 : i32
    return %c0_i32, %arg0, %c0_i32_0 : i32, i32, i32
  }
  func.func @transform_5(%arg0: i32) -> (i32, i32, i32) {
    %c0_i32 = arith.constant 0 : i32
    %c0_i32_0 = arith.constant 0 : i32
    %c0_i32_1 = arith.constant 0 : i32
    return %arg0, %c0_i32, %c0_i32_0 : i32, i32, i32
  }
  func.func @transform_6(%arg0: i32) -> (i32, i32, i32, i32) {
    %c0_i32 = arith.constant 0 : i32
    %c0_i32_0 = arith.constant 0 : i32
    %c0_i32_1 = arith.constant 0 : i32
    %c0_i32_2 = arith.constant 0 : i32
    return %c0_i32, %arg0, %c0_i32_0, %c0_i32_1 : i32, i32, i32, i32
  }
  func.func @transform_7(%arg0: i32) -> (i32, i32, i32, i32) {
    %c0_i32 = arith.constant 0 : i32
    %c0_i32_0 = arith.constant 0 : i32
    %c0_i32_1 = arith.constant 0 : i32
    %c0_i32_2 = arith.constant 0 : i32
    return %c0_i32, %c0_i32_0, %arg0, %c0_i32_1 : i32, i32, i32, i32
  }
}

</mosaic_0001>

<bundles_post_ra>
// kernel: tpu_custom_call.1
= control target key start
LH: loop header
LB: loop body
LE: loop exit
PB: predicated region body
PF: predicated region fallthrough
CT: control target
= control target key end

     0   :  { %s2565_s0 = inlined_call_operand.<no memory space> [shape: f32[1], index: 0, kind: input, shape index: {}]   ;;  %s2566_s1 = inlined_call_operand.hbm [shape: f32[4,256], index: 1, kind: input, shape index: {}]   ;;  %s2567_s2 = inlined_call_operand.hbm [shape: f32[16,256], index: 2, kind: input, shape index: {}]   ;;  %s2568_s3 = inlined_call_operand.hbm [shape: f32[2,4,256], index: 3, kind: input, shape index: {}]   ;;  %s2569_s4 = inlined_call_operand.hbm [shape: f32[3,16,256], index: 4, kind: input, shape index: {}]   ;;  %s2570_s5 = inlined_call_operand.hbm [shape: u8[2,8,256], index: 5, kind: output, shape index: {0}]   ;;  %s2571_s6 = inlined_call_operand.hbm [shape: s8[3,2,8,256], index: 6, kind: output, shape index: {1}]   ;;  %s2572_s7 = inlined_call_operand.hbm [shape: f32[3,3,16,256], index: 7, kind: output, shape index: {2}]  }
   0x1   :  { %2593 = sst [smem:[#allocation24_spill]] %s2567_s2 }
   0x2   :  { %13 = sst [smem:[#allocation2]] %s2565_s0 }
   0x3   :  { %14 = vsyncpa [#allocation4], 0 }
   0x4   :  { %15 = vsyncpa [#allocation7], 0 }
   0x5   :  { %17 = vsyncpa [#allocation7 + $0x1], 0 }
   0x6   :  { %18 = vsyncpa [#allocation10], 0 }
   0x7   :  { %20 = vsyncpa [#allocation10 + $0x1], 0 }
   0x8   :  { %21 = vsyncpa [#allocation5], 0 }
   0x9   :  { %23 = vsyncpa [#allocation5 + $0x1], 0 }
   0xa   :  { %24 = vsyncpa [#allocation13], 0 }
   0xb   :  { %26 = vsyncpa [#allocation13 + $0x1], 0  ;;  %s1670_s26 = smov 0   ;;  %s1672_s27 = smov 0  }
   0xc   :  { %s1674_s28 = smov 0   ;;  %s1676_s29 = smov 0  }
   0xd LB: > { %2594 = sst [smem:[#allocation20_spill]] %s1602_s28  ;;  %s1691_s0 = sadd.s32 1, %s1606_s29   ;;  %s1606_s29 = sphi %s1676_s29, %s2675_s29   ;;  %s1602_s28 = sphi %s1674_s28, %s2677_s28   ;;  %s1598_s27 = sphi %s1672_s27, %s2679_s27   ;;  %s1594_s26 = sphi %s1670_s26, %s2678_s26  }
   0xe   : > { %2595 = sst [smem:[#allocation21_spill]] %s1606_s29  ;;  %s81_s30 = sadd.s32 1, %s1602_s28 }
   0xf   : > { %2596 = sst [smem:[#allocation22_spill]] %s1691_s0  ;;  %s78_s8 = ssub.s32 %s1606_s29, %s1691_s0 }
  0x10   : > { %p2573_p0 = scmp.ne.s32.totalorder %s1602_s28, %s1598_s27  ;;  %p79_p1 = scmp.eq.s32.totalorder %s78_s8, 0 }
  0x11   : > { %p89_p2 = scmp.eq.s32.totalorder %s1606_s29, 0  ;;  %p1294_p4 = scmp.lt.s32.totalorder %s1606_s29, 2 }
  0x12   : > { %s1702_s9 = scalar_select %p79_p1, %s1602_s28, %s81_s30  }
  0x13   : > { %p90_p5 = por %p89_p2, %p2573_p0  ;;  %s262_s10 = sand.u32 1, %s1606_s29  }
  0x14   : > { %2597 = sst [smem:[#allocation23_spill]] %s1702_s9  ;;  %s1709_s11 = sand.u32 1, %s1602_s28  }
  0x15   : > { %s1202_s12 = sshll.u32 %s1709_s11, 4  ;;  %s1243_s13 = sshll.u32 %s1606_s29, 8 }
  0x16   : > { %s2598_s2 = sld [smem:[#allocation24_spill]]  ;;  %s266_s17 = scalar_lea.vmem [#allocation6], %s1202_s12 }
  0x17   : > { %s274_s18 = sshll.u32 %s266_s17, 4  ;;  %p1718_p6 = pnand %p1294_p4, %p90_p5  ;;  %s1722_s18 = int_to_ptr.vmem [resolvable:$true] %s274_s18 }
  0x18   : > { %s1728_s23 = scalar_lea.hbm %s2569_s4, %s1243_s13  ;;  %s1730_s24 = scalar_lea.sflag [#allocation7], %s262_s10 }
  0x19   : > { %s2599_s19 = scalar_select %p1718_p6, 1, 0 }
  0x1a   : > { %p1736_p8 = pneg %p1718_p6 }
  0x1c   : > { %s1716_s16 = scalar_lea.hbm %s2598_s2, %s1243_s13  ;;  %s1359_s14 = scalar_lea.hbm %s2598_s2, 512 }
  0x1d   : > { %s1354_s25 = scalar_lea.hbm %s1716_s16, 256  ;;  %p1360_p11 = scmp.lt.u32.totalorder %s1716_s16, %s2598_s2 }
  0x1e   : > { %p1355_p7 = scmp.ne.s32.totalorder %s1716_s16, %s1354_s25  ;;  %p1361_p12 = scmp.lt.u32.totalorder %s1359_s14, %s1354_s25 }
  0x1f   : > { %s2600_s30 = scalar_select %p1736_p8, 1, 0 }
  0x20   : > { %p1357_p9 = pnand %p1736_p8, %p1355_p7  ;;  %p1362_p13 = por %p1361_p12, %p1360_p11 }
  0x21   : > { %p1363_p1 = scmp.lt.u32.totalorder %s1354_s25, %s1716_s16 }
  0x22   : > { %p1358_p10 = pneg %p1357_p9 }
  0x23   : > { %p1364_p2 = por %p1363_p1, %p1362_p13 }
  0x25   : > { %p1365_p4 = pnand %p1364_p2, %p1358_p10 }
  0x27   : > { %1368 = shalt.err (!%p1365_p4)
}
  0x28   : > { %s1369_s10 = scalar_lea.vmem %s1722_s18, 256  ;;  %s1608_s17 = smov [#allocation6]  }
  0x29   : > { %p1370_p5 = scmp.ne.s32.totalorder %s1722_s18, %s1369_s10  ;;  %s1374_s21 = sshll.u32 %s1608_s17, 4  ;;  %s1375_s21 = int_to_ptr.vmem [resolvable:$false] %s1374_s21 }
  0x2a   : > { %s1376_s22 = scalar_lea.vmem %s1375_s21, 512  ;;  %p1377_p3 = scmp.lt.s32.totalorder %s1722_s18, %s1375_s21 }
  0x2b   : > { %p1372_p7 = pnand %p1370_p5, %p1736_p8  ;;  %p1378_p0 = scmp.lt.s32.totalorder %s1376_s22, %s1369_s10 }
  0x2d   : > { %p1373_p9 = pneg %p1372_p7  ;;  %p1379_p11 = por %p1378_p0, %p1377_p3 }
  0x2f   : > { %p1380_p12 = pnand %p1379_p11, %p1373_p9 }
  0x31   : > { %1383 = shalt.err (!%p1380_p12)
}
  0x32   : > { %1276 = dma.hbm_to_vmem [thread:$0]  (!%p1718_p6), %s1716_s16, 256, %s1722_s18, %s1730_s24  }
  0x33   : > { %s1761_s25 = sadd.s32 4294967295, %s1606_s29   ;;  %s2574_s8 = sadd.s32 4294967294, %s1606_s29  }
  0x34   : > { %p94_p0 = scmp.ne.s32.totalorder %s1598_s27, %s1594_s26  ;;  %p2578_p3 = scmp.eq.s32.totalorder %s1761_s25, 0 }
  0x35   : > { %p170_p10 = scmp.eq.s32.totalorder %s1761_s25, 1  ;;  %p176_p13 = scmp.eq.s32.totalorder %s2574_s8, 1 }
  0x36   : > { %p1772_p1 = por %p2578_p3, %p94_p0  ;;  %p1199_p2 = scmp.ge.s32.totalorder %s1606_s29, 1 }
  0x37   : > { %p2602_p4 = scmp.ne.s32.totalorder %s1602_s28, %s1598_s27  ;;  %p1784_p7 = por %p176_p13, %p94_p0 }
  0x38   : > { %s2601_s12 = scalar_select %p1772_p1, 1, 0 }
  0x39   : > { %p1780_p5 = por %p170_p10, %p2602_p4  ;;  %p235_p9 = scmp.lt.s32.totalorder %s1606_s29, 3 }
  0x3a   : > { %s2604_s18 = scalar_select %p1784_p7, 1, 0 }
  0x3b   : > { %s2603_s16 = scalar_select %p1780_p5, 1, 0 }
  0x3c   : > { %s1205_s14 = sshll.u32 %s1709_s11, 3  ;;  %p1790_p11 = pnand %p1199_p2, %p235_p9 }
  0x3d   : > { %s1609_s13 = smov [#allocation3]   ;;  %s1244_s17 = sshll.u32 %s1606_s29, 7 }
  0x3e   : > { %s2605_s15 = scalar_select %p1790_p11, 1, 0 }
  0x3f   : > { %s251_s10 = sshll.u32 %s1609_s13, 4  ;;  %p1269_p12 = pneg %p1790_p11  ;;  %s1794_s10 = int_to_ptr.vmem [resolvable:$true] %s251_s10 }
  0x40   : > { %s1802_s8 = scalar_lea.hbm %s2568_s3, %s1244_s17  ;;  %s285_s20 = scalar_lea.vmem [#allocation8], %s1205_s14 }
  0x41   : > { %s293_s2 = sshll.u32 %s285_s20, 4  ;;  %p1806_p0 = pnand %p1269_p12, %p2578_p3  ;;  %s294_s2 = int_to_ptr.vmem [resolvable:$true] %s293_s2 }
  0x42   : > { %s1384_s13 = scalar_lea.hbm %s1802_s8, 128  ;;  %s1389_s22 = scalar_lea.hbm %s2568_s3, 256 }
  0x43   : > { %s2606_s9 = scalar_select %p1806_p0, 1, 0 }
  0x44   : > { %p1385_p10 = scmp.ne.s32.totalorder %s1802_s8, %s1384_s13  ;;  %p1390_p4 = scmp.lt.u32.totalorder %s1802_s8, %s2568_s3 }
  0x45   : > { %p1391_p9 = scmp.lt.u32.totalorder %s1389_s22, %s1384_s13  ;;  %p1393_p12 = scmp.lt.u32.totalorder %s1384_s13, %s1802_s8 }
  0x46   : > { %p1387_p13 = pnand %p1385_p10, %p1736_p8 }
  0x47   : > { %p1392_p7 = por %p1391_p9, %p1390_p4 }
  0x48   : > { %p1388_p2 = pneg %p1387_p13 }
  0x49   : > { %p1394_p3 = por %p1393_p12, %p1392_p7 }
  0x4b   : > { %p1395_p5 = pnand %p1394_p3, %p1388_p2 }
  0x4d   : > { %1398 = shalt.err (!%p1395_p5)
}
  0x4e   : > { %s1399_s20 = scalar_lea.vmem %s294_s2, 128  ;;  %s1610_s14 = smov [#allocation8]  }
  0x4f   : > { %p1400_p1 = scmp.ne.s32.totalorder %s294_s2, %s1399_s20  ;;  %s1404_s29 = sshll.u32 %s1610_s14, 4  ;;  %s1405_s29 = int_to_ptr.vmem [resolvable:$false] %s1404_s29 }
  0x50   : > { %s1406_s21 = scalar_lea.vmem %s1405_s29, 256  ;;  %p1407_p11 = scmp.lt.s32.totalorder %s294_s2, %s1405_s29 }
  0x51   : > { %p1402_p10 = pnand %p1400_p1, %p1736_p8  ;;  %p1408_p0 = scmp.lt.s32.totalorder %s1406_s21, %s1399_s20 }
  0x53   : > { %p1403_p13 = pneg %p1402_p10  ;;  %p1409_p6 = por %p1408_p0, %p1407_p11 }
  0x55   : > { %p1410_p4 = pnand %p1409_p6, %p1403_p13 }
  0x57   : > { %1413 = shalt.err (!%p1410_p4)
}
  0x58   : > { %p2607_p9 = scmp.ne.s32.totalorder %s2599_s19, 0  ;;  %s1414_s13 = scalar_lea.hbm %s2566_s1, 128 }
  0x59   : > { %p1415_p3 = scmp.ne.s32.totalorder %s2566_s1, %s1414_s13  ;;  %p2608_p1 = scmp.ne.s32.totalorder %s2606_s9, 0 }
  0x5a   : > { %1279 = dma.hbm_to_vmem [thread:$0]  (!%p2607_p9), %s1802_s8, 128, %s294_s2, %s1730_s24  }
  0x5b   : > { %p1416_p5 = pneg %p2608_p1  ;;  %p1421_p6 = scmp.lt.u32.totalorder %s1414_s13, %s2566_s1 }
  0x5d   : > { %p1417_p7 = pnand %p1416_p5, %p1415_p3 }
  0x5f   : > { %p1418_p11 = pneg %p1417_p7 }
  0x61   : > { %p1423_p0 = pnand %p1421_p6, %p1418_p11 }
  0x63   : > { %1426 = shalt.err (!%p1423_p0)
}
  0x64   : > { %s1427_s2 = scalar_lea.vmem %s1794_s10, 128  ;;  %p1435_p13 = scmp.lt.s32.totalorder %s1794_s10, %s1794_s10 }
  0x65   : > { %p1428_p2 = scmp.ne.s32.totalorder %s1794_s10, %s1427_s2  ;;  %p1436_p4 = scmp.lt.s32.totalorder %s1427_s2, %s1427_s2 }
  0x67   : > { %p1430_p12 = pnand %p1428_p2, %p1416_p5  ;;  %p1437_p9 = por %p1436_p4, %p1435_p13 }
  0x69   : > { %p1431_p10 = pneg %p1430_p12 }
  0x6b   : > { %p1438_p8 = pnand %p1437_p9, %p1431_p10 }
  0x6d   : > { %1441 = shalt.err (!%p1438_p8)
}
  0x6e   : > { %1272 = dma.hbm_to_vmem [thread:$0]  (!%p2608_p1), %s2566_s1, 128, %s1794_s10, [#allocation4]  }
  0x6f   : > { %s2609_s14 = smul.u32 48, %s1709_s11  ;;  %s301_s0 = scalar_lea.sflag [#allocation10], %s1709_s11 }
  0x70   : > { %s1442_s13 = scalar_lea.hbm %s1728_s23, 768  ;;  %p2610_p9 = scmp.ne.s32.totalorder %s2600_s30, 0 }
  0x71   : > { %s304_s21 = scalar_lea.vmem [#allocation9], %s2609_s14  ;;  %p1443_p8 = scmp.ne.s32.totalorder %s1728_s23, %s1442_s13 }
  0x72   : > { %s311_s28 = sshll.u32 %s304_s21, 4  ;;  %s1447_s22 = scalar_lea.hbm %s2569_s4, 1536  ;;  %s1851_s28 = int_to_ptr.vmem [resolvable:$true] %s311_s28 }
  0x73   : > { %p1445_p3 = pnand %p1443_p8, %p2610_p9  ;;  %p1448_p7 = scmp.lt.u32.totalorder %s1728_s23, %s2569_s4 }
  0x74   : > { %p1449_p1 = scmp.lt.u32.totalorder %s1447_s22, %s1442_s13  ;;  %p1451_p6 = scmp.lt.u32.totalorder %s1442_s13, %s1728_s23 }
  0x75   : > { %p1446_p5 = pneg %p1445_p3 }
  0x76   : > { %p1450_p11 = por %p1449_p1, %p1448_p7 }
  0x78   : > { %p1452_p0 = por %p1451_p6, %p1450_p11 }
  0x7a   : > { %p1453_p2 = pnand %p1452_p0, %p1446_p5 }
  0x7c   : > { %1456 = shalt.err (!%p1453_p2)
}
  0x7d   : > { %s1457_s10 = scalar_lea.vmem %s1851_s28, 768  ;;  %s1611_s2 = smov [#allocation9]  }
  0x7e   : > { %p1458_p12 = scmp.ne.s32.totalorder %s1851_s28, %s1457_s10  ;;  %s1462_s24 = sshll.u32 %s1611_s2, 4  ;;  %s1463_s24 = int_to_ptr.vmem [resolvable:$false] %s1462_s24 }
  0x7f   : > { %s1464_s8 = scalar_lea.vmem %s1463_s24, 1536  ;;  %p1465_p4 = scmp.lt.s32.totalorder %s1851_s28, %s1463_s24 }
  0x80   : > { %p1460_p10 = pnand %p1458_p12, %p2610_p9  ;;  %p1466_p8 = scmp.lt.s32.totalorder %s1464_s8, %s1457_s10 }
  0x82   : > { %p1461_p13 = pneg %p1460_p10  ;;  %p1467_p3 = por %p1466_p8, %p1465_p4 }
  0x84   : > { %p1468_p7 = pnand %p1467_p3, %p1461_p13 }
  0x86   : > { %1471 = shalt.err (!%p1468_p7)
}
  0x87   : > { %s1612_s14 = smov 512   ;;  %s1613_s21 = smov 256  }
  0x88   : > { %s1614_s13 = smov 16   ;;  %p2611_p5 = scmp.ne.s32.totalorder %s2599_s19, 0 }
  0x89   : > { %p2612_p9 = scmp.ne.s32.totalorder %s2605_s15, 0 }
  0x8a   : > { %1282 = dma.hbm_to_vmem [thread:$0]  (!%p2611_p5), %s1728_s23, 768, %s1851_s28, %s301_s0, %s1612_s14, %s1613_s21, %s1614_s13  }
  0x8b   : > { %323 = sbr.rel (%p2612_p9) target bundleno = 455 (0x1c7), region = 40  ;;  %p2613_p1 = scmp.eq.s32.totalorder (!%p2612_p9), %s1761_s25, 0 }
  0x92   : > { %1573 = dma.done.wait (%p2613_p1), [#allocation4], 128   ;;  %p2614_p11 = pmov %p2613_p1 }
  0x93   : > { %s329_s30 = sand.u32 1, %s1761_s25   ;;  %s1885_s9 = sand.u32 1, %s1598_s27  }
  0x94   : > { %1575 = vsyncadd (%p2614_p11), [#allocation4], 4294967168  ;;  %s1212_s19 = sshll.u32 %s1885_s9, 4  ;;  %s330_s11 = scalar_lea.sflag [#allocation7], %s329_s30 }
  0x95   : > { %s333_s23 = scalar_lea.vmem [#allocation6], %s1212_s19  ;;  %p2615_p6 = scmp.ne.s32.totalorder %s2601_s12, 0 }
  0x97   : > { %1577 = dma.done.wait (%p2615_p6), %s330_s11, 384  }
  0x98   : > { %1579 = vsyncadd (%p2615_p6), %s330_s11, 4294966912  ;;  %s1213_s15 = sshll.u32 %s1885_s9, 3  ;;  %s1250_s28 = smul.u32 48, %s1885_s9 }
  0x99   : > { %s342_s0 = scalar_lea.vmem [#allocation8], %s1213_s15  ;;  %s348_s17 = scalar_lea.sflag [#allocation10], %s1885_s9 }
  0x9a   : > { %s1897_s22 = scalar_lea.vmem [#allocation9], %s1250_s28 }
  0x9b   : > { %1581 = dma.done.wait (%p2615_p6), %s348_s17, 768  }
  0x9c   : > { %1583 = vsyncadd (%p2615_p6), %s348_s17, 4294966528  ;;  %v423_v0 = vlaneseq  ;;  %s404_s29 = sld [smem:[#allocation2]]  ;;  %s1215_s20 = sshll.u32 %s1761_s25, 3  ;;  %v1909_v3 = vld [vmem:[%s333_s23] sm:$0xff]  ;;  %v1918_v8 = vld [vmem:[%s333_s23 + $0x8] sm:$0xff]  ;;  %v1616_v15 = vmov 0  }
  0x9d   : > { %v1911_v4 = vld [vmem:[%s342_s0] sm:$0xff]  ;;  %v426_v5 = vstv %s1215_s20  ;;  %s1615_s10 = smov 112   ;;  %v434_v6 = vrot.slane %v1909_v3, 1  ;;  %v435_v22 = vrot.slane %v1918_v8, 1  ;;  %s1617_s12 = smov 127   ;;  %v1977_v28 = vld [vmem:[%s1897_s22] sm:$0xff] }
  0x9e   : > { %v1903_v1 = vshrl.u32 %v423_v0, 7  ;;  %462 = vrot.lane.b32.xlu0 %v1909_v3, %s1615_s10  ;;  %v1989_v33 = vld [vmem:[%s1897_s22 + $0x10] sm:$0xff]  ;;  %v647_v34 = vrot.slane %v1977_v28, 1  ;;  %v1999_v38 = vld [vmem:[%s1897_s22 + $0x20] sm:$0xff]  ;;  %v2052_v60 = vld [vmem:[%s1897_s22 + $0x8] sm:$0xff]  ;;  %s1251_s2 = smul.u32 12, %s1885_s9 }
  0x9f   : > { %v687_v39 = vrot.slane %v1989_v33, 1  ;;  %v726_v42 = vrot.slane %v1999_v38, 1  ;;  %v2035_v52 = vld [vmem:[#allocation3] ss:$4 sm:$0x3]  ;;  %v648_v63 = vrot.slane %v2052_v60, 1 }
  0xa0   : > { %v1907_v2 = vsub.s32 0, %v1903_v1  ;;  %vm431_vm0 = vcmp.eq.s32.totalorder %v1903_v1, 7  ;;  %v1922_v9 = vadd.s32 %v426_v5, %v1903_v1  ;;  %v448_v13 = vsub.s32 4, %v1903_v1  ;;  %v2044_v56 = vld [vmem:[#allocation3 + $0x1] ss:$4 sm:$0x3] }
  0xa1   : > { %v1944_v17 = vsub.s32 1, %v1903_v1  ;;  %v1955_v20 = vsub.s32 2, %v1903_v1  ;;  %v1958_v21 = vsub.s32 3, %v1903_v1  ;;  %v659_v32 = vsub.s32 5, %v1903_v1  ;;  %s2091_s24 = scalar_lea.vmem [#allocation12], %s1251_s2  ;;  %s1252_s8 = smul.u32 144, %s1885_s9 }
  0xa2   : > { %v445_v7 = vrot.slane %v1911_v4, %v1907_v2  ;;  %v1925_v11 = vstv %s404_s29  ;;  %464 = vrot.lane.b32.xlu0 %v1918_v8, %s1615_s10  ;;  %vm2589_vm1 = vcmp.lt.s32.totalorder %v1922_v9, 15  ;;  %v449_v23 = vrot.slane %v1911_v4, %v448_v13  ;;  %s1246_s21 = sshll.u32 %s1761_s25, 6  ;;  %s993_s13 = sshll.u32 %s2091_s24, 4  ;;  %s2338_s13 = int_to_ptr.vmem [resolvable:$true] %s993_s13 }
  0xa3   : > { %vm483_vm3 = vcmp.lt.f32.partialorder %v1909_v3, %v1925_v11  ;;  %v656_v25 = vrot.slane %v1911_v4, %v1944_v17  ;;  %v696_v29 = vrot.slane %v1911_v4, %v1955_v20  ;;  %v735_v30 = vrot.slane %v1911_v4, %v1958_v21  ;;  %s2133_s14 = scalar_lea.vmem [#allocation14], %s1252_s8  ;;  %s2333_s23 = scalar_lea.hbm %s2571_s6, %s1246_s21 }
  0xa4   : > { %v455_v10 = vrot.slane %v445_v7, %v1907_v2  ;;  %v459_v27 = vrot.slane %v449_v23, %v1907_v2  ;;  %vm484_vm10 = vcmp.lt.f32.partialorder %v1918_v8, %v1925_v11  ;;  %v660_v47 = vrot.slane %v1911_v4, %v659_v32  ;;  %s2355_s15 = scalar_lea.sflag [#allocation13], %s329_s30  ;;  %s1472_s28 = scalar_lea.vmem %s2338_s13, 192 }
  0xa5   : > { %v666_v35 = vrot.slane %v656_v25, %v1944_v17  ;;  %v706_v41 = vrot.slane %v696_v29, %v1955_v20  ;;  %v745_v43 = vrot.slane %v735_v30, %v1958_v21  ;;  %v699_v48 = vsub.s32 6, %v1903_v1  ;;  %p1473_p0 = scmp.ne.s32.totalorder %s2338_s13, %s1472_s28  ;;  %p2654_p2 = scmp.ne.s32.totalorder %s2603_s16, 0 }
  0xa6   : > { %v460_v12 = vsel %vm431_vm0, %v455_v10, %v434_v6  ;;  %472 = vrot.lane.b32.xlu0 %v1909_v3, %s1617_s12  ;;  %v461_v31 = vsel %vm431_vm0, %v459_v27, %v435_v22  ;;  %v738_v51 = vsub.s32 7, %v1903_v1  ;;  %v428_v53 = vcvt.s32.f32 %v1922_v9  ;;  %v2072_v27 = vld [vmem:[%s1897_s22 + $0x18] sm:$0xff]  ;;  %s1618_s0 = smov [#allocation12]  }
  0xa7   : > { %vm485_vm2 = vcmp.lt.f32.partialorder %v460_v12, %v1925_v11  ;;  %v614_v14 = vsub.f32 %v460_v12, %v1909_v3  ;;  %vm486_vm9 = vcmp.lt.f32.partialorder %v461_v31, %v1925_v11  ;;  %v615_v36 = vsub.f32 %v461_v31, %v1918_v8  ;;  %p1474_p12 = pnand %p1473_p0, %p2654_p2  ;;  %s1476_s17 = sshll.u32 %s1618_s0, 4  ;;  %s1477_s17 = int_to_ptr.vmem [resolvable:$false] %s1476_s17 }
  0xa8   : > { %v1938_v16 = vsel %vm485_vm2, 1, %v1616_v15  ;;  %vm610_vm4 = vmxor %vm483_vm3, %vm485_vm2  ;;  %v1996_v37 = vsel %vm486_vm9, 1, %v1616_v15  ;;  %v671_v45 = vsel %vm431_vm0, %v666_v35, %v647_v34  ;;  %v2040_v54 = vsub.f32 %v1925_v11, %v1909_v3  ;;  %p1479_p13 = scmp.lt.s32.totalorder %s2338_s13, %s1477_s17 }
  0xa9   : > { %v616_v18 = vand.u32 2147483647, %v614_v14  ;;  %495 = vrot.lane.b32.xlu1 %v1938_v16, %s1615_s10  ;;  %vm1950_vm5 = vmand %vm610_vm4, %vm2589_vm1  ;;  %v617_v40 = vand.u32 2147483647, %v615_v36  ;;  %v673_v57 = vsub.f32 %v671_v45, %v1977_v28  ;;  %v711_v58 = vsel %vm431_vm0, %v706_v41, %v687_v39  ;;  %p1475_p10 = pneg %p1474_p12 }
  0xaa   : > { %vm634_vm7 = vmpackc.low %vm1950_vm5, %vm1950_vm5  ;;  %501 = vrot.lane.b32.xlu0 %v1938_v16, %s1617_s12  ;;  %v750_v59 = vsel %vm431_vm0, %v745_v43, %v726_v42  ;;  %v670_v0 = vrot.slane %v660_v47, %v1944_v17  ;;  %v700_v5 = vrot.slane %v1911_v4, %v699_v48  ;;  %v739_v10 = vrot.slane %v1911_v4, %v738_v51  ;;  %v2077_v4 = vld [vmem:[%s1897_s22 + $0x28] sm:$0xff]  ;;  %s1478_s22 = scalar_lea.vmem %s1477_s17, 384 }
  0xab   : > { %vm1964_vm6 = vcmp.gt.f32.partialorder %v616_v18, 1e-12  ;;  %vm635_vm8 = vmpackc.even %vm634_vm7, %vm634_vm7  ;;  %vm2017_vm12 = vcmp.gt.f32.partialorder %v617_v40, 1e-12  ;;  %v429_v12 = vmul.f32 0.06666667, %v428_v53  ;;  %v588_v13 = vrot.slane %v2035_v52, %v1907_v2  ;;  %p1480_p4 = scmp.lt.s32.totalorder %s1478_s22, %s1472_s28 }
  0xac   : > { %v620_v26 = vsel %vm1964_vm6, %v614_v14, 1.0  ;;  %v638_v44 = vsel %vm635_vm8, 16843009, %v1616_v15  ;;  %vm611_vm11 = vmxor %vm484_vm10, %vm486_vm9  ;;  %v621_v50 = vsel %vm2017_vm12, %v615_v36, 1.0  ;;  %v601_v14 = vrot.slane %v2044_v56, %v1907_v2 }
  0xad   : > { %1342 = vrcp.f32 %v620_v26  ;;  %497 = vrot.lane.b32.xlu1 %v1996_v37, %s1615_s10  ;;  %vm2025_vm13 = vmand %vm611_vm11, %vm2589_vm1  ;;  %v640_v55 = vunpack.c.0.s8 %v638_v44  ;;  %v675_v23 = vadd.f32 0.06666667, %v673_v57  ;;  %v713_v25 = vsub.f32 %v711_v58, %v1989_v33  ;;  %p1481_p8 = por %p1480_p4, %p1479_p13 }
  0xae   : > { %817 = vrot.lane.b32.xlu0 %v1989_v33, %s1615_s10  ;;  %vm636_vm14 = vmpackc.low %vm2025_vm13, %vm2025_vm13  ;;  %1344 = vrcp.f32 %v621_v50  ;;  %v752_v26 = vsub.f32 %v750_v59, %v1999_v38  ;;  %v672_v29 = vsel %vm431_vm0, %v670_v0, %v648_v63  ;;  %v688_v30 = vrot.slane %v2072_v27, 1 }
  0xaf   : > { %vm637_vm15 = vmpackc.even %vm636_vm14, %vm636_vm14  ;;  %v710_v31 = vrot.slane %v700_v5, %v1955_v20  ;;  %v727_v35 = vrot.slane %v2077_v4, 1  ;;  %v749_v36 = vrot.slane %v739_v10, %v1958_v21  ;;  %v2086_v39 = vadd.f32 %v429_v12, %v1977_v28  ;;  %p1482_p3 = pnand %p1481_p8, %p1475_p10 }
  0xb0   : > { %v639_v61 = vsel %vm637_vm15, 16843009, %v1616_v15  ;;  %v2089_v40 = vadd.f32 %v588_v13, %v1989_v33  ;;  %v2097_v20 = vadd.f32 %v601_v14, %v1999_v38  ;;  %v2103_v21 = vsub.f32 %v1925_v11, %v1918_v8 }
  0xb1   : > { %474 = vrot.lane.b32.xlu1 %v1918_v8, %s1617_s12  ;;  %v641_v6 = vunpack.c.0.s8 %v639_v61  ;;  %v674_v42 = vsub.f32 %v672_v29, %v2052_v60  ;;  %v712_v48 = vsel %vm431_vm0, %v710_v31, %v688_v30  ;;  %v751_v50 = vsel %vm431_vm0, %v749_v36, %v727_v35 }
  0xb2   : > { %933 = vrot.lane.b32.xlu0 %v1999_v38, %s1617_s12  ;;  %v592_v57 = vrot.slane %v2035_v52, %v1944_v17  ;;  %v605_v58 = vrot.slane %v2044_v56, %v1944_v17  ;;  %v714_v1 = vsub.f32 %v712_v48, %v2072_v27  ;;  %v753_v0 = vsub.f32 %v751_v50, %v2077_v4 }
  0xb3   : > { %v642_v18 = vpack.c.b16 %v641_v6, %v640_v55  ;;  %v676_v61 = vadd.f32 0.06666667, %v674_v42  ;;  %v2141_v5 = vadd.f32 %v429_v12, %v2052_v60  ;;  %vm2591_vm2 = vcmask 916480  }
  0xb4   : > { %v2144_v19 = vadd.f32 %v592_v57, %v2072_v27  ;;  %v524_v57 = vshll.u32 %v1996_v37, 1 }
  0xb5   : > { %503 = vrot.lane.b32.xlu1 %v1996_v37, %s1617_s12  ;;  %v643_v32 = vpack.c.b8 %v642_v18, %v642_v18  ;;  %v519_v37 = vsel %vm483_vm3, 1, %v1616_v15 }
  0xb6   : > { %797 = vrot.lane.b32.xlu0 %v1977_v28, %s1615_s10 }
  0xb7   : > { %v1343_v62 = vpop.eup %1342  ;;  %644 = vst [vmem:[%s2091_s24] sm:$0xf] %v643_v32 }
  0xb8   : > { %v626_v7 = vmul.f32 %v1343_v62, %v2040_v54  ;;  %v1345_v43 = vpop.eup %1344 }
  0xb9   : > { %819 = vrot.lane.b32.xlu1 %v2072_v27, %s1615_s10  ;;  %v627_v24 = vmul.f32 %v1345_v43, %v2103_v21 }
  0xba   : > { %v628_v22 = vmax.f32 %v626_v7, 0.0  ;;  %839 = vrot.lane.b32.xlu0 %v1999_v38, %s1615_s10  ;;  %v2149_v7 = vadd.f32 %v605_v58, %v2077_v4 }
  0xbb   : > { %v629_v59 = vmax.f32 %v627_v24, 0.0 }
  0xbc   : > { %v630_v34 = vmin.f32 %v628_v22, 1.0 }
  0xbd   : > { %935 = vrot.lane.b32.xlu1 %v2077_v4, %s1617_s12  ;;  %v631_v56 = vmin.f32 %v629_v59, 1.0 }
  0xbe   : > { %v632_v41 = vsel %vm1964_vm6, %v630_v34, 0.5  ;;  %893 = vrot.lane.b32.xlu0 %v1977_v28, %s1617_s12 }
  0xbf   : > { %v677_v44 = vmul.f32 %v675_v23, %v632_v41  ;;  %v715_v45 = vmul.f32 %v713_v25, %v632_v41  ;;  %v754_v47 = vmul.f32 %v752_v26, %v632_v41  ;;  %v633_v6 = vsel %vm2017_vm12, %v631_v56, 0.5  ;;  %v418_v26 = vld [vmem:[#allocation3 + $0x2] ss:$4 sm:$0x3] }
  0xc0   : > { %v678_v10 = vmul.f32 %v676_v61, %v633_v6  ;;  %v716_v13 = vmul.f32 %v714_v1, %v633_v6  ;;  %v755_v14 = vmul.f32 %v753_v0, %v633_v6  ;;  %vm419_vm0 = vcmp.gt.f32.partialorder %v418_v26, 0.5  ;;  %v421_v41 = vld [vmem:[#allocation3 + $0x3] ss:$4 sm:$0x3] }
  0xc1   : > { %v679_v51 = vadd.f32 %v677_v44, %v2086_v39  ;;  %v717_v53 = vadd.f32 %v715_v45, %v2089_v40  ;;  %v756_v55 = vadd.f32 %v754_v47, %v2097_v20  ;;  %799 = vrot.lane.b32.xlu1 %v2052_v60, %s1615_s10  ;;  %v551_v29 = vsel %vm419_vm0, 1, %v1616_v15 }
  0xc2   : > { %v680_v18 = vadd.f32 %v678_v10, %v2141_v5  ;;  %v718_v22 = vadd.f32 %v716_v13, %v2144_v19  ;;  %v757_v12 = vadd.f32 %v755_v14, %v2149_v7  ;;  %v555_v31 = vrot.slane %v551_v29, %v1907_v2 }
  0xc3   : > { %v681_v62 = vsel %vm1950_vm5, %v679_v51, 0.0  ;;  %v719_v63 = vsel %vm1950_vm5, %v717_v53, 0.0  ;;  %v758_v52 = vsel %vm1950_vm5, %v756_v55, 0.0  ;;  %v559_v36 = vrot.slane %v551_v29, %v1944_v17 }
  0xc4   : > { %683 = vst [vmem:[%s2133_s14] sm:$0xff] %v681_v62  ;;  %1216 = vst [vmem:[%s2133_s14 + $0x10] sm:$0xff] %v719_v63  ;;  %v682_v23 = vsel %vm2025_vm13, %v680_v18, 0.0  ;;  %v720_v46 = vsel %vm2025_vm13, %v718_v22, 0.0  ;;  %v759_v25 = vsel %vm2025_vm13, %v757_v12, 0.0  ;;  %vm2171_vm4 = vcmp.eq.s32.totalorder %v555_v31, 1 }
  0xc5   : > { %1218 = vst [vmem:[%s2133_s14 + $0x20] sm:$0xff] %v758_v52  ;;  %841 = vrot.lane.b32.xlu1 %v2077_v4, %s1615_s10  ;;  %684 = vst [vmem:[%s2133_s14 + $0x8] sm:$0xff] %v682_v23  ;;  %vm422_vm9 = vcmp.gt.f32.partialorder %v421_v41, 0.5  ;;  %vm2198_vm12 = vcmp.eq.s32.totalorder %v559_v36, 1  ;;  %v523_v55 = vshll.u32 %v1938_v16, 1  ;;  %v520_v63 = vsel %vm484_vm10, 1, %v1616_v15 }
  0xc6   : > { %1217 = vst [vmem:[%s2133_s14 + $0x18] sm:$0xff] %v720_v46  ;;  %1219 = vst [vmem:[%s2133_s14 + $0x28] sm:$0xff] %v759_v25  ;;  %v564_v16 = vsel %vm422_vm9, 1, %v1616_v15  ;;  %v526_v13 = vor.u32 %v524_v57, %v520_v63  ;;  %vm2590_vm9 = vcmask 1039360   ;;  %v2638_v41 = vmov 0 }
  0xc7   : > { %v568_v6 = vrot.slane %v564_v16, %v1907_v2  ;;  %v525_v10 = vor.u32 %v523_v55, %v519_v37  ;;  %v572_v46 = vrot.slane %v564_v16, %v1944_v17 }
  0xc9   : > { %895 = vrot.lane.b32.xlu1 %v2052_v60, %s1617_s12 }
 0x110   : > { %v463_v30 = vpop.permute.xlu0 %462 }
 0x114   : > { %v465_v32 = vpop.permute.xlu0 %464 }
 0x115   : > { %v467_v34 = vsel %vm2591_vm2, %v463_v30, %v465_v32  ;;  %v471_v49 = vsel %vm2591_vm2, %v465_v32, %v463_v30 }
 0x116   : > { %v767_v42 = vsub.f32 %v467_v34, %v1909_v3  ;;  %v768_v43 = vsub.f32 %v471_v49, %v1918_v8  ;;  %vm487_vm5 = vcmp.lt.f32.partialorder %v467_v34, %v1925_v11  ;;  %vm488_vm6 = vcmp.lt.f32.partialorder %v471_v49, %v1925_v11 }
 0x117   : > { %v493_v44 = vsel %vm487_vm5, 1, %v1616_v15  ;;  %vm763_vm7 = vmxor %vm483_vm3, %vm487_vm5  ;;  %v494_v45 = vsel %vm488_vm6, 1, %v1616_v15 }
 0x118   : > { %v769_v47 = vand.u32 2147483647, %v767_v42  ;;  %v770_v48 = vand.u32 2147483647, %v768_v43  ;;  %513 = vrot.lane.b32.xlu0 %v493_v44, %s1617_s12  ;;  %vm2190_vm8 = vmand %vm763_vm7, %vm2171_vm4  ;;  %515 = vrot.lane.b32.xlu1 %v494_v45, %s1617_s12  ;;  %v473_v50 = vpop.permute.xlu0 %472  ;;  %v531_v30 = vshll.u32 %v493_v44, 3  ;;  %v532_v31 = vshll.u32 %v494_v45, 3 }
 0x119   : > { %vm785_vm11 = vmpackc.low %vm2190_vm8, %vm2190_vm8 }
 0x11a   : > { %vm2204_vm13 = vcmp.gt.f32.partialorder %v769_v47, 1e-12  ;;  %vm2208_vm14 = vcmp.gt.f32.partialorder %v770_v48, 1e-12  ;;  %vm786_vm15 = vmpackc.even %vm785_vm11, %vm785_vm11  ;;  %vm2247_vm11 = vcmp.eq.s32.totalorder %v568_v6, 1 }
 0x11b   : > { %v496_v51 = vpop.permute.xlu1 %495  ;;  %v773_v61 = vsel %vm2204_vm13, %v767_v42, 1.0  ;;  %v774_v1 = vsel %vm2208_vm14, %v768_v43, 1.0  ;;  %v789_v62 = vsel %vm786_vm15, 16843009, %v1616_v15  ;;  %vm764_vm0 = vmxor %vm484_vm10, %vm488_vm6  ;;  %vm2251_vm15 = vcmp.eq.s32.totalorder %v572_v46, 1 }
 0x11c   : > { %1346 = vrcp.f32 %v773_v61  ;;  %vm2233_vm5 = vmand %vm764_vm0, %vm2198_vm12  ;;  %v502_v0 = vpop.permute.xlu0 %501  ;;  %v791_v56 = vunpack.c.0.s8 %v789_v62  ;;  %v2639_v41 = vsel %vm2251_vm15, 4294967295, %v2638_v41 }
 0x11d   : > { %1348 = vrcp.f32 %v774_v1  ;;  %vm787_vm6 = vmpackc.low %vm2233_vm5, %vm2233_vm5 }
 0x11e   : > { %vm788_vm7 = vmpackc.even %vm787_vm6, %vm787_vm6 }
 0x11f   : > { %v790_v14 = vsel %vm788_vm7, 16843009, %v1616_v15  ;;  %v498_v18 = vpop.permute.xlu1 %497 }
 0x120   : > { %v792_v22 = vunpack.c.0.s8 %v790_v14  ;;  %v500_v12 = vsel %vm2591_vm2, %v498_v18, %v496_v51  ;;  %v499_v23 = vsel %vm2591_vm2, %v496_v51, %v498_v18  ;;  %v818_v36 = vpop.permute.xlu0 %817 }
 0x121   : > { %509 = vrot.lane.b32.xlu1 %v500_v12, %s1617_s12  ;;  %v528_v25 = vshll.u32 %v500_v12, 2  ;;  %507 = vrot.lane.b32.xlu0 %v499_v23, %s1617_s12  ;;  %v527_v26 = vshll.u32 %v499_v23, 2 }
 0x122   : > { %v793_v2 = vpack.c.b16 %v792_v22, %v791_v56 }
 0x123   : > { %v530_v32 = vor.u32 %v528_v25, %v526_v13  ;;  %v529_v34 = vor.u32 %v527_v26, %v525_v10  ;;  %v475_v49 = vpop.permute.xlu1 %474 }
 0x124   : > { %v794_v17 = vpack.c.b8 %v793_v2, %v793_v2  ;;  %v477_v42 = vsel %vm2590_vm9, %v473_v50, %v475_v49  ;;  %v481_v43 = vsel %vm2590_vm9, %v475_v49, %v473_v50  ;;  %v934_v18 = vpop.permute.xlu0 %933 }
 0x125   : > { %v534_v47 = vor.u32 %v532_v31, %v530_v32  ;;  %v533_v48 = vor.u32 %v531_v30, %v529_v34  ;;  %vm489_vm0 = vcmp.lt.f32.partialorder %v477_v42, %v1925_v11  ;;  %vm490_vm6 = vcmp.lt.f32.partialorder %v481_v43, %v1925_v11  ;;  %915 = vrot.lane.b32.xlu1 %v2072_v27, %s1617_s12 }
 0x126   : > { %v1347_v44 = vpop.eup %1346  ;;  %1220 = vst [vmem:[%s2091_s24 + $0x4] sm:$0xf] %v794_v17  ;;  %v521_v45 = vsel %vm489_vm0, 1, %v1616_v15  ;;  %v522_v51 = vsel %vm490_vm6, 1, %v1616_v15  ;;  %vm859_vm7 = vmxor %vm483_vm3, %vm489_vm0  ;;  %v863_v50 = vsub.f32 %v477_v42, %v1909_v3  ;;  %v864_v55 = vsub.f32 %v481_v43, %v1918_v8  ;;  %913 = vrot.lane.b32.xlu0 %v1989_v33, %s1617_s12 }
 0x127   : > { %v1349_v57 = vpop.eup %1348  ;;  %v777_v61 = vmul.f32 %v1347_v44, %v2040_v54  ;;  %v535_v1 = vshll.u32 %v521_v45, 4  ;;  %v536_v62 = vshll.u32 %v522_v51, 4  ;;  %vm860_vm1 = vmxor %vm484_vm10, %vm490_vm6  ;;  %v504_v16 = vpop.permute.xlu1 %503 }
 0x128   : > { %v778_v37 = vmul.f32 %v1349_v57, %v2103_v21  ;;  %vm2278_vm3 = vmand %vm859_vm7, %vm2247_vm11  ;;  %v865_v63 = vand.u32 2147483647, %v863_v50  ;;  %v866_v56 = vand.u32 2147483647, %v864_v55  ;;  %v505_v6 = vsel %vm2590_vm9, %v502_v0, %v504_v16 }
 0x129   : > { %v779_v10 = vmax.f32 %v777_v61, 0.0  ;;  %vm2285_vm0 = vmand %vm860_vm1, %vm2251_vm15  ;;  %v506_v8 = vsel %vm2590_vm9, %v504_v16, %v502_v0  ;;  %v537_v11 = vor.u32 %v535_v1, %v533_v48  ;;  %v538_v14 = vor.u32 %v536_v62, %v534_v47 }
 0x12a   : > { %v780_v22 = vmax.f32 %v778_v37, 0.0  ;;  %vm2290_vm10 = vcmp.gt.f32.partialorder %v865_v63, 1e-12  ;;  %vm2294_vm6 = vcmp.gt.f32.partialorder %v866_v56, 1e-12  ;;  %vm881_vm1 = vmpackc.low %vm2278_vm3, %vm2278_vm3  ;;  %v539_v46 = vshll.u32 %v505_v6, 5 }
 0x12b   : > { %v781_v25 = vmin.f32 %v779_v10, 1.0  ;;  %v869_v0 = vsel %vm2290_vm10, %v863_v50, 1.0  ;;  %v870_v26 = vsel %vm2294_vm6, %v864_v55, 1.0  ;;  %vm882_vm7 = vmpackc.even %vm881_vm1, %vm881_vm1  ;;  %v540_v2 = vshll.u32 %v506_v8, 5  ;;  %v820_v30 = vpop.permute.xlu1 %819  ;;  %v798_v50 = vpop.permute.xlu0 %797 }
 0x12c   : > { %v782_v31 = vmin.f32 %v780_v22, 1.0  ;;  %1350 = vrcp.f32 %v869_v0  ;;  %vm883_vm9 = vmpackc.low %vm2285_vm0, %vm2285_vm0  ;;  %v885_v32 = vsel %vm882_vm7, 16843009, %v1616_v15  ;;  %v2309_v34 = vor.u32 %v539_v46, %v537_v11 }
 0x12d   : > { %1352 = vrcp.f32 %v870_v26  ;;  %vm884_vm2 = vmpackc.even %vm883_vm9, %vm883_vm9  ;;  %v887_v49 = vunpack.c.0.s8 %v885_v32  ;;  %v2311_v17 = vor.u32 %v540_v2, %v538_v14  ;;  %vm2648_vm1 = vcmask 916480  }
 0x12e   : > { %v886_v42 = vsel %vm884_vm2, 16843009, %v1616_v15  ;;  %v821_v43 = vsel %vm2648_vm1, %v818_v36, %v820_v30  ;;  %vm2649_vm15 = vmmov %vm2648_vm1  ;;  %v2322_v55 = vsel %vm2204_vm13, %v781_v25, 0.5  ;;  %v2326_v15 = vsel %vm2208_vm14, %v782_v31, 0.5 }
 0x12f   : > { %v825_v47 = vsel %vm2649_vm15, %v820_v30, %v818_v36  ;;  %v888_v48 = vunpack.c.0.s8 %v886_v42  ;;  %v826_v44 = vsub.f32 %v821_v43, %v1989_v33  ;;  %v936_v51 = vpop.permute.xlu1 %935  ;;  %vm2650_vm2 = vcmask 1039360   ;;  %vm2652_vm14 = vmmov %vm2648_vm1  ;;  %v840_v14 = vpop.permute.xlu0 %839 }
 0x130   : > { %v827_v45 = vsub.f32 %v825_v47, %v2072_v27  ;;  %v2336_v1 = vsel %vm2650_vm2, %v934_v18, %v936_v51  ;;  %vm2651_vm13 = vmmov %vm2650_vm2 }
 0x131   : > { %v889_v57 = vpack.c.b16 %v888_v48, %v887_v49  ;;  %v828_v36 = vadd.f32 0.06666667, %v826_v44  ;;  %v941_v16 = vsel %vm2651_vm13, %v936_v51, %v934_v18  ;;  %vm2653_vm9 = vmmov %vm2648_vm1  ;;  %v942_v18 = vsub.f32 %v2336_v1, %v1999_v38 }
 0x132   : > { %v829_v61 = vadd.f32 0.06666667, %v827_v45  ;;  %v943_v46 = vsub.f32 %v941_v16, %v2077_v4 }
 0x133   : > { %v890_v58 = vpack.c.b8 %v889_v57, %v889_v57  ;;  %v830_v59 = vmul.f32 %v828_v36, %v2322_v55  ;;  %v800_v37 = vpop.permute.xlu1 %799 }
 0x134   : > { %v831_v62 = vmul.f32 %v829_v61, %v2326_v15  ;;  %v801_v63 = vsel %vm2652_vm14, %v798_v50, %v800_v37  ;;  %v805_v56 = vsel %vm2653_vm9, %v800_v37, %v798_v50 }
 0x135   : > { %1227 = vst [vmem:[%s2091_s24 + $0x8] sm:$0xf] %v890_v58  ;;  %v832_v6 = vadd.f32 %v830_v59, %v2089_v40  ;;  %v806_v8 = vsub.f32 %v801_v63, %v1977_v28  ;;  %v807_v11 = vsub.f32 %v805_v56, %v2052_v60 }
 0x136   : > { %v833_v10 = vadd.f32 %v831_v62, %v2144_v19  ;;  %v1351_v22 = vpop.eup %1350 }
 0x137   : > { %1485 = shalt.err (!%p1482_p3)
}
 0x138   : > { %s1486_s30 = scalar_lea.hbm %s2333_s23, 192  ;;  %s1490_s10 = scalar_lea.hbm %s2571_s6, 384 }
 0x139   : > { %p1487_p7 = scmp.ne.s32.totalorder %s2333_s23, %s1486_s30  ;;  %p1491_p1 = scmp.lt.u32.totalorder %s2333_s23, %s2571_s6 }
 0x13a   : > { %p1492_p11 = scmp.lt.u32.totalorder %s1490_s10, %s1486_s30  ;;  %p1494_p0 = scmp.lt.u32.totalorder %s1486_s30, %s2333_s23 }
 0x13b   : > { %p1488_p5 = pnand %p1487_p7, %p2654_p2 }
 0x13c   : > { %p1493_p6 = por %p1492_p11, %p1491_p1 }
 0x13d   : > { %p1489_p9 = pneg %p1488_p5 }
 0x13e   : > { %p1495_p12 = por %p1494_p0, %p1493_p6 }
 0x140   : > { %p1496_p10 = pnand %p1495_p12, %p1489_p9 }
 0x142   : > { %1499 = shalt.err (!%p1496_p10)
}
 0x143   : > { %s1619_s24 = smov 64   ;;  %s1620_s8 = smov 128   ;;  %v1353_v25 = vpop.eup %1352  ;;  %v873_v0 = vmul.f32 %v1351_v22, %v2040_v54  ;;  %v834_v26 = vsel %vm2190_vm8, %v832_v6, 0.0  ;;  %v835_v2 = vsel %vm2233_vm5, %v833_v10, 0.0  ;;  %v808_v30 = vmul.f32 %v806_v8, %v2322_v55  ;;  %v842_v31 = vpop.permute.xlu1 %841  ;;  %vm2655_vm15 = vmmov %vm2648_vm1 }
 0x144   : > { %s1621_s19 = smov 4   ;;  %v874_v32 = vmul.f32 %v1353_v25, %v2103_v21  ;;  %1223 = vst [vmem:[%s2133_s14 + $0x40] sm:$0xff] %v834_v26  ;;  %1224 = vst [vmem:[%s2133_s14 + $0x48] sm:$0xff] %v835_v2  ;;  %v809_v49 = vmul.f32 %v807_v11, %v2326_v15  ;;  %v843_v42 = vsel %vm2655_vm15, %v840_v14, %v842_v31  ;;  %v894_v45 = vpop.permute.xlu0 %893  ;;  %v944_v21 = vadd.f32 0.06666667, %v942_v18  ;;  %s1248_s28 = sshll.u32 %s1761_s25, 8 }
 0x145   : > { %1264 = dma.vmem_to_hbm [thread:$0]  (%p2654_p2), %s2338_s13, 192, %s2333_s23, %s2355_s15, %s1619_s24, %s1620_s8, %s1621_s19   ;;  %vm2656_vm7 = vmmov %vm2648_vm1  ;;  %v875_v54 = vmax.f32 %v873_v0, 0.0  ;;  %v810_v47 = vadd.f32 %v808_v30, %v2086_v39  ;;  %v848_v48 = vsub.f32 %v843_v42, %v1999_v38  ;;  %v945_v50 = vadd.f32 0.06666667, %v943_v46 }
 0x146   : > { %v847_v43 = vsel %vm2656_vm7, %v842_v31, %v840_v14  ;;  %v876_v51 = vmax.f32 %v874_v32, 0.0  ;;  %v811_v57 = vadd.f32 %v809_v49, %v2141_v5  ;;  %vm2657_vm1 = vmmov %vm2650_vm2  ;;  %s1214_s13 = sshll.u32 %s1885_s9, 2  ;;  %s1009_s0 = sshll.u32 %s2133_s14, 4  ;;  %s2493_s0 = int_to_ptr.vmem [resolvable:$true] %s1009_s0 }
 0x147   : > { %v849_v44 = vsub.f32 %v847_v43, %v2077_v4  ;;  %v877_v36 = vmin.f32 %v875_v54, 1.0  ;;  %v812_v61 = vsel %vm2190_vm8, %v810_v47, 0.0  ;;  %v850_v1 = vmul.f32 %v848_v48, %v2322_v55  ;;  %v896_v59 = vpop.permute.xlu1 %895  ;;  %vm2658_vm2 = vmmov %vm2657_vm1  ;;  %s387_s11 = scalar_lea.vmem [#allocation11], %s1214_s13  ;;  %s2482_s30 = scalar_lea.hbm %s2570_s5, %s1246_s21 }
 0x148   : > { %v878_v62 = vmin.f32 %v876_v51, 1.0  ;;  %v813_v38 = vsel %vm2233_vm5, %v811_v57, 0.0  ;;  %1221 = vst [vmem:[%s2133_s14 + $0x30] sm:$0xff] %v812_v61  ;;  %v897_v4 = vsel %vm2657_vm1, %v894_v45, %v896_v59  ;;  %v901_v16 = vsel %vm2658_vm2, %v896_v59, %v894_v45  ;;  %vm2664_vm13 = vmmov %vm2657_vm1  ;;  %s980_s23 = sshll.u32 %s387_s11, 4  ;;  %s2489_s10 = scalar_lea.hbm %s2572_s7, %s1248_s28  ;;  %s2484_s23 = int_to_ptr.vmem [resolvable:$true] %s980_s23 }
 0x149   : > { %v851_v58 = vmul.f32 %v849_v44, %v2326_v15  ;;  %v879_v37 = vsel %vm2290_vm10, %v877_v36, 0.5  ;;  %1222 = vst [vmem:[%s2133_s14 + $0x38] sm:$0xff] %v813_v38  ;;  %v852_v55 = vadd.f32 %v850_v1, %v2097_v20  ;;  %v902_v63 = vsub.f32 %v897_v4, %v1977_v28  ;;  %vm2662_vm10 = vmmov %vm2657_vm1  ;;  %s956_s25 = scalar_lea.sflag [#allocation5], %s1885_s9  ;;  %s1500_s21 = scalar_lea.vmem %s2484_s23, 64 }
 0x14a   : > { %v880_v56 = vsel %vm2294_vm6, %v878_v62, 0.5  ;;  %v946_v6 = vmul.f32 %v944_v21, %v879_v37  ;;  %v903_v10 = vsub.f32 %v901_v16, %v2052_v60  ;;  %vm2663_vm6 = vmmov %vm2657_vm1  ;;  %p1501_p13 = scmp.ne.s32.totalorder %s2484_s23, %s1500_s21  ;;  %s1622_s12 = smov [#allocation11]  }
 0x14b   : > { %v853_v15 = vadd.f32 %v851_v58, %v2149_v7  ;;  %v947_v8 = vmul.f32 %v945_v50, %v880_v56  ;;  %v854_v12 = vsel %vm2190_vm8, %v852_v55, 0.0  ;;  %v904_v14 = vmul.f32 %v902_v63, %v879_v37  ;;  %vm2665_vm14 = vmmov %vm2657_vm1  ;;  %s1504_s2 = sshll.u32 %s1622_s12, 4  ;;  %s1505_s2 = int_to_ptr.vmem [resolvable:$false] %s1504_s2 }
 0x14c   : > { %v948_v28 = vadd.f32 %v946_v6, %v2097_v20  ;;  %1225 = vst [vmem:[%s2133_s14 + $0x50] sm:$0xff] %v854_v12  ;;  %v905_v23 = vmul.f32 %v903_v10, %v880_v56  ;;  %vm2659_vm8 = vcmp.lt.s32.totalorder %v1922_v9, 15  ;;  %vm2670_vm2 = vmmov %vm2657_vm1  ;;  %p1502_p4 = pnand %p1501_p13, %p2654_p2  ;;  %s1506_s24 = scalar_lea.vmem %s1505_s2, 128 }
 0x14d   : > { %v855_v11 = vsel %vm2233_vm5, %v853_v15, 0.0  ;;  %v949_v22 = vadd.f32 %v947_v8, %v2149_v7  ;;  %v906_v60 = vadd.f32 %v904_v14, %v2086_v39  ;;  %vm2439_vm5 = vmand %vm2659_vm8, %vm2171_vm4  ;;  %p1507_p3 = scmp.lt.s32.totalorder %s2484_s23, %s1505_s2  ;;  %p1508_p7 = scmp.lt.s32.totalorder %s1506_s24, %s1500_s21 }
 0x14e   : > { %1226 = vst [vmem:[%s2133_s14 + $0x58] sm:$0xff] %v855_v11  ;;  %v950_v18 = vsel %vm2278_vm3, %v948_v28, 0.0  ;;  %v907_v24 = vadd.f32 %v905_v23, %v2141_v5  ;;  %vm2666_vm9 = vmmov %vm2659_vm8  ;;  %p1503_p8 = pneg %p1502_p4 }
 0x14f   : > { %v951_v52 = vsel %vm2285_vm0, %v949_v22, 0.0  ;;  %1232 = vst [vmem:[%s2133_s14 + $0x80] sm:$0xff] %v950_v18  ;;  %v908_v20 = vsel %vm2278_vm3, %v906_v60, 0.0  ;;  %vm2452_vm15 = vmand %vm2666_vm9, %vm2198_vm12  ;;  %vm2669_vm12 = vnez %v2639_v41  ;;  %p1509_p5 = por %p1508_p7, %p1507_p3 }
 0x150   : > { %1233 = vst [vmem:[%s2133_s14 + $0x88] sm:$0xff] %v951_v52  ;;  %v909_v46 = vsel %vm2285_vm0, %v907_v24, 0.0  ;;  %1228 = vst [vmem:[%s2133_s14 + $0x60] sm:$0xff] %v908_v20 }
 0x151   : > { %1229 = vst [vmem:[%s2133_s14 + $0x68] sm:$0xff] %v909_v46  ;;  %vm575_vm4 = vmand %vm2439_vm5, %vm2247_vm11  ;;  %p1510_p9 = pnand %p1509_p5, %p1503_p8 }
 0x152   : > { %vm576_vm7 = vmand %vm2452_vm15, %vm2669_vm12 }
 0x18a   : > { %v514_v39 = vpop.permute.xlu0 %513  ;;  %v516_v7 = vpop.permute.xlu1 %515 }
 0x18b   : > { %v517_v26 = vsel %vm2662_vm10, %v514_v39, %v516_v7  ;;  %v518_v2 = vsel %vm2663_vm6, %v516_v7, %v514_v39 }
 0x18c   : > { %v547_v42 = vshll.u32 %v517_v26, 7  ;;  %v548_v43 = vshll.u32 %v518_v2, 7 }
 0x193   : > { %v508_v25 = vpop.permute.xlu0 %507  ;;  %v510_v0 = vpop.permute.xlu1 %509 }
 0x194   : > { %v511_v30 = vsel %vm2664_vm13, %v508_v25, %v510_v0  ;;  %v512_v31 = vsel %vm2665_vm14, %v510_v0, %v508_v25 }
 0x195   : > { %v543_v32 = vshll.u32 %v511_v30, 6  ;;  %v544_v49 = vshll.u32 %v512_v31, 6 }
 0x197   : > { %v545_v54 = vor.u32 %v543_v32, %v2309_v34  ;;  %v546_v53 = vor.u32 %v544_v49, %v2311_v17  ;;  %v916_v9 = vpop.permute.xlu1 %915 }
 0x198   : > { %v914_v47 = vpop.permute.xlu0 %913 }
 0x199   : > { %v549_v48 = vor.u32 %v547_v42, %v545_v54  ;;  %v550_v44 = vor.u32 %v548_v43, %v546_v53  ;;  %v917_v45 = vsel %vm2657_vm1, %v914_v47, %v916_v9  ;;  %v921_v51 = vsel %vm2670_vm2, %v916_v9, %v914_v47 }
 0x19a   : > { %v922_v21 = vsub.f32 %v917_v45, %v1989_v33  ;;  %v923_v34 = vsub.f32 %v921_v51, %v2072_v27 }
 0x19b   : > { %v577_v41 = vsel %vm575_vm4, %v549_v48, 0  ;;  %v578_v17 = vsel %vm576_vm7, %v550_v44, 0 }
 0x19c   : > { %v579_v50 = vpack.c.b16 %v578_v17, %v577_v41  ;;  %v924_v57 = vmul.f32 %v922_v21, %v879_v37  ;;  %v925_v36 = vmul.f32 %v923_v34, %v880_v56 }
 0x19e   : > { %v580_v33 = vpack.c.b8 %v579_v50, %v579_v50  ;;  %v926_v27 = vadd.f32 %v924_v57, %v2089_v40  ;;  %v927_v29 = vadd.f32 %v925_v36, %v2144_v19 }
 0x1a0   : > { %v928_v61 = vsel %vm2278_vm3, %v926_v27, 0.0  ;;  %v929_v1 = vsel %vm2285_vm0, %v927_v29, 0.0  ;;  %581 = vst [vmem:[%s387_s11] sm:$0xf] %v580_v33 }
 0x1a1   : > { %1230 = vst [vmem:[%s2133_s14 + $0x70] sm:$0xff] %v928_v61  ;;  %1231 = vst [vmem:[%s2133_s14 + $0x78] sm:$0xff] %v929_v1 }
 0x1a2   : > { %1513 = shalt.err (!%p1510_p9)
}
 0x1a3   : > { %s1514_s9 = scalar_lea.hbm %s2482_s30, 64  ;;  %s1518_s19 = scalar_lea.hbm %s2570_s5, 128 }
 0x1a4   : > { %p1515_p1 = scmp.ne.s32.totalorder %s2482_s30, %s1514_s9  ;;  %p1519_p0 = scmp.lt.u32.totalorder %s2482_s30, %s2570_s5 }
 0x1a5   : > { %p1520_p12 = scmp.lt.u32.totalorder %s1518_s19, %s1514_s9  ;;  %p1522_p13 = scmp.lt.u32.totalorder %s1514_s9, %s2482_s30 }
 0x1a6   : > { %p1516_p11 = pnand %p1515_p1, %p2654_p2 }
 0x1a7   : > { %p1521_p10 = por %p1520_p12, %p1519_p0 }
 0x1a8   : > { %p1517_p6 = pneg %p1516_p11 }
 0x1a9   : > { %p1523_p4 = por %p1522_p13, %p1521_p10 }
 0x1ab   : > { %p1524_p8 = pnand %p1523_p4, %p1517_p6 }
 0x1ad   : > { %1527 = shalt.err (!%p1524_p8)
}
 0x1ae   : > { %1263 = dma.vmem_to_hbm [thread:$0]  (%p2654_p2), %s2484_s23, 64, %s2482_s30, %s956_s25  }
 0x1af   : > { %s1528_s28 = scalar_lea.vmem %s2493_s0, 2304  ;;  %s1623_s17 = smov [#allocation14]  }
 0x1b0   : > { %p1529_p3 = scmp.ne.s32.totalorder %s2493_s0, %s1528_s28  ;;  %s1532_s22 = sshll.u32 %s1623_s17, 4  ;;  %s1533_s22 = int_to_ptr.vmem [resolvable:$false] %s1532_s22 }
 0x1b1   : > { %s1534_s29 = scalar_lea.vmem %s1533_s22, 4608  ;;  %p1535_p9 = scmp.lt.s32.totalorder %s2493_s0, %s1533_s22 }
 0x1b2   : > { %p1530_p7 = pnand %p1529_p3, %p2654_p2  ;;  %p1536_p1 = scmp.lt.s32.totalorder %s1534_s29, %s1528_s28 }
 0x1b4   : > { %p1531_p5 = pneg %p1530_p7  ;;  %p1537_p11 = por %p1536_p1, %p1535_p9 }
 0x1b6   : > { %p1538_p6 = pnand %p1537_p11, %p1531_p5 }
 0x1b8   : > { %1541 = shalt.err (!%p1538_p6)
}
 0x1b9   : > { %s1542_s23 = scalar_lea.hbm %s2489_s10, 2304  ;;  %s1546_s25 = scalar_lea.hbm %s2572_s7, 4608 }
 0x1ba   : > { %p1543_p0 = scmp.ne.s32.totalorder %s2489_s10, %s1542_s23  ;;  %p1547_p13 = scmp.lt.u32.totalorder %s2489_s10, %s2572_s7 }
 0x1bb   : > { %p1548_p4 = scmp.lt.u32.totalorder %s1546_s25, %s1542_s23  ;;  %p1550_p3 = scmp.lt.u32.totalorder %s1542_s23, %s2489_s10 }
 0x1bc   : > { %p1544_p12 = pnand %p1543_p0, %p2654_p2 }
 0x1bd   : > { %p1549_p8 = por %p1548_p4, %p1547_p13 }
 0x1be   : > { %p1545_p10 = pneg %p1544_p12 }
 0x1bf   : > { %p1551_p7 = por %p1550_p3, %p1549_p8 }
 0x1c1   : > { %p1552_p5 = pnand %p1551_p7, %p1545_p10 }
 0x1c3   : > { %1555 = shalt.err (!%p1552_p5)
}
 0x1c4   : > { %s1624_s2 = smov 256   ;;  %s1625_s24 = smov 512  }
 0x1c5   : > { %s1626_s9 = smov 16  }
 0x1c6   : > { %1265 = dma.vmem_to_hbm [thread:$0]  (%p2654_p2), %s2493_s0, 2304, %s2489_s10, %s2355_s15, %s1624_s2, %s1625_s24, %s1626_s9  }
 0x1c7 PF: > { %s2671_s14 = sld [smem:[#allocation21_spill]]  ;;  %s1024_s8 = sand.u32 1, %s1594_s26  }
 0x1c8   : > { %p2672_p9 = scmp.ne.s32.totalorder %s2604_s18, 0  ;;  %s1025_s19 = scalar_lea.sflag [#allocation5], %s1024_s8 }
 0x1cd   : > { %p2673_p1 = scmp.ge.s32.totalorder %s2671_s14, 2 }
 0x1cf   : > { %p1284_p11 = pnand %p2673_p1, %p2672_p9 }
 0x1d1   : > { %1585 = dma.done.wait (!%p1284_p11), %s1025_s19, 64  }
 0x1d2   : > { %1587 = vsyncadd (!%p1284_p11), %s1025_s19, 4294967232  ;;  %s2674_s13 = sadd.s32 4294967294, %s2671_s14  }
 0x1d3   : > { %s1033_s11 = sand.u32 1, %s2674_s13  }
 0x1d4   : > { %s1034_s28 = scalar_lea.sflag [#allocation13], %s1033_s11 }
 0x1d5   : > { %1589 = dma.done.wait (!%p1284_p11), %s1034_s28, 2496  }
 0x1d6   : > { %1591 = vsyncadd (!%p1284_p11), %s1034_s28, 4294964800  ;;  %s2675_s29 = sld [smem:[#allocation22_spill]]  ;;  %s2676_s16 = sld [smem:[#allocation20_spill]] }
 0x1d7   : > { %s2677_s28 = sld [smem:[#allocation23_spill]]  ;;  %s2678_s26 = smov %s1598_s27 }
 0x1dc   : > { %p29_p2 = scmp.ge.s32.totalorder %s2675_s29, 4   ;;  %s2679_s27 = smov %s2676_s16 }
 0x1de   :  { %31 = sbr.rel (!%p29_p2) target bundleno = 13 (0xd), region = 159 }
 0x1e5   :  { %1048 = vsyncpa [#allocation4], 1 }
 0x1e6   :  { %1050 = vsyncpa [#allocation4 + $0x1], 1 }
 0x1e7   :  { %1051 = vsyncpa [#allocation7], 1 }
 0x1e8   :  { %1053 = vsyncpa [#allocation7 + $0x1], 1 }
 0x1e9   :  { %1054 = vsyncpa [#allocation10], 1 }
 0x1ea   :  { %1056 = vsyncpa [#allocation10 + $0x1], 1 }
 0x1eb   :  { %1057 = vsyncpa [#allocation5], 1 }
 0x1ec   :  { %1059 = vsyncpa [#allocation5 + $0x1], 1 }
 0x1ed   :  { %1060 = vsyncpa [#allocation13], 1 }
 0x1ee   :  { %1062 = vsyncpa [#allocation13 + $0x1], 1 }

</bundles_post_ra>
